<compile_context>
chip_gen: v7x
topology: tpu7x:2x2x1
jax: 0.10.0
libtpu: 0.0.40
codegen_flags: <defaults>
</compile_context>

<pallas_src>
import functools

import jax
import jax.numpy as jnp
from jax import lax
from jax.experimental import pallas as pl
from jax.experimental.pallas import tpu as pltpu

block_size = 256      # module constant (max T)
n_embd = 384          # module constant
head_size = 64        # n_embd // n_head in the surrounding model


def fuse_head_weights(wq, wk, wv):
    """One-time (parameter-init) fusion of the q/k/v projection weights.

    wq/wk/wv: (C, N) f32 where N = n_heads * head_size (head columns stacked).
    Returns (C, 3N) bf16 with the C**-0.5 softmax scale folded into wq.
    """
    C = wq.shape[0]
    scale = float(C) ** -0.5          # reference uses C = n_embd, not head_size
    return jnp.concatenate([wq * scale, wk, wv], axis=1).astype(jnp.bfloat16)


def _heads_kernel(x_ref, w_ref, o_ref, *, head_size, n_heads):
    # x_ref: (Bblk, T, C) f32   w_ref: (C, 3N) bf16   o_ref: (Bblk, T, N)
    Bblk, T, C = x_ref.shape
    N = n_heads * head_size

    # Fused QKV projection: one MXU matmul, bf16 operands, f32 accumulation.
    x2 = x_ref[...].astype(jnp.bfloat16).reshape(Bblk * T, C)
    qkv = jnp.dot(x2, w_ref[...], preferred_element_type=jnp.float32)  # (Bblk*T, 3N)

    # q/k/v slabs (128-aligned when N is a multiple of 128, e.g. 6 heads * 64).
    q = qkv[:, :N].astype(jnp.bfloat16).reshape(Bblk, T, N)
    k = qkv[:, N:2 * N].astype(jnp.bfloat16).reshape(Bblk, T, N)
    v = qkv[:, 2 * N:].astype(jnp.bfloat16).reshape(Bblk, T, N)

    # Causal additive bias, built once (f32, finite so it stays NaN-safe).
    row = lax.broadcasted_iota(jnp.int32, (T, T), 0)
    col = lax.broadcasted_iota(jnp.int32, (T, T), 1)
    neg_bias = jnp.where(col <= row, 0.0, -1e30).astype(jnp.float32)   # (T, T)

    outs = []
    for h in range(n_heads):                       # unrolled, n_heads is small
        sl = slice(h * head_size, (h + 1) * head_size)
        qh, kh, vh = q[:, :, sl], k[:, :, sl], v[:, :, sl]

        # Scores: the C**-0.5 scale is already folded into wq.
        s = jnp.einsum('bqd,bkd->bqk', qh, kh,
                       preferred_element_type=jnp.float32)             # (Bblk,T,T)
        s = s + neg_bias

        # Numerically stable softmax with EXACT normalization (f32).
        m = jnp.max(s, axis=-1, keepdims=True)
        p = jnp.exp(s - m)
        p = p * (1.0 / jnp.sum(p, axis=-1, keepdims=True))

        outs.append(jnp.einsum('bqk,bkd->bqd', p.astype(jnp.bfloat16), vh,
                               preferred_element_type=jnp.float32))    # (Bblk,T,H)

    # Single lane-dense store of the concatenated heads.
    o_ref[...] = jnp.concatenate(outs, axis=-1).astype(o_ref.dtype)


def head_forward(x, w_qkv_fused, head_size, *, batch_block=2):
    """x: (B, T, C) f32; w_qkv_fused: (C, 3*n_heads*head_size) bf16
    (from fuse_head_weights).  Returns (B, T, n_heads*head_size) in x.dtype;
    each head_size-wide column group equals the PyTorch Head.forward output."""
    B, T, C = x.shape
    three_n = w_qkv_fused.shape[1]
    N = three_n // 3
    n_heads = N // head_size
    assert n_heads * head_size == N and T <= block_size

    Bblk = min(batch_block, B)
    assert B % Bblk == 0

    kernel = functools.partial(_heads_kernel, head_size=head_size, n_heads=n_heads)
    return pl.pallas_call(
        kernel,
        out_shape=jax.ShapeDtypeStruct((B, T, N), x.dtype),
        grid=(B // Bblk,),
        in_specs=[
            pl.BlockSpec((Bblk, T, C), lambda b: (b, 0, 0)),
            pl.BlockSpec((C, three_n), lambda b: (0, 0)),   # resident weights
        ],
        out_specs=pl.BlockSpec((Bblk, T, N), lambda b: (b, 0, 0)),
        compiler_params=pltpu.CompilerParams(dimension_semantics=("parallel",)),
    )(x, w_qkv_fused)


def _reference(x, wq, wk, wv, head_size):
    """Per-head PyTorch Head.forward semantics (f32, inference dropout=identity)."""
    x32 = x.astype(jnp.float32)
    B, T, C = x.shape
    n_heads = wq.shape[1] // head_size
    mask = jnp.tril(jnp.ones((T, T), dtype=bool))
    outs = []
    for h in range(n_heads):
        sl = slice(h * head_size, (h + 1) * head_size)
        q = x32 @ wq[:, sl].astype(jnp.float32)
        k = x32 @ wk[:, sl].astype(jnp.float32)
        v = x32 @ wv[:, sl].astype(jnp.float32)
        wei = (q @ jnp.swapaxes(k, -2, -1)) * (float(C) ** -0.5)
        wei = jnp.where(mask, wei, -jnp.inf)
        wei = jax.nn.softmax(wei, axis=-1)
        outs.append(wei @ v)
    return jnp.concatenate(outs, axis=-1)


if __name__ == "__main__":
    B, T, C, H = 4, 128, n_embd, head_size        # T <= block_size (256)
    key = jax.random.PRNGKey(0)
    kx, kq, kk, kv = jax.random.split(key, 4)
    x = jax.random.normal(kx, (B, T, C), dtype=jnp.float32)

    # --- exact module configuration: a single Head(head_size=64) ---
    wq1 = jax.random.normal(kq, (C, H), dtype=jnp.float32) * (C ** -0.5)
    wk1 = jax.random.normal(kk, (C, H), dtype=jnp.float32) * (C ** -0.5)
    wv1 = jax.random.normal(kv, (C, H), dtype=jnp.float32) * (C ** -0.5)
    w1 = fuse_head_weights(wq1, wk1, wv1)          # done once, not per call
    out1 = jax.block_until_ready(head_forward(x, w1, H))
    ref1 = _reference(x, wq1, wk1, wv1, H)
    assert out1.shape == (B, T, H)
    # tolerance accounts for bf16 MXU operands (f32 accumulation) vs f32 reference
    assert jnp.allclose(out1, ref1, atol=2e-2, rtol=2e-2), "single-head mismatch"

    # --- fused configuration: all 6 heads of the surrounding model in one kernel ---
    NH = n_embd // head_size                       # 6
    kq6, kk6, kv6 = jax.random.split(jax.random.PRNGKey(1), 3)
    wq6 = jax.random.normal(kq6, (C, NH * H), dtype=jnp.float32) * (C ** -0.5)
    wk6 = jax.random.normal(kk6, (C, NH * H), dtype=jnp.float32) * (C ** -0.5)
    wv6 = jax.random.normal(kv6, (C, NH * H), dtype=jnp.float32) * (C ** -0.5)
    w6 = fuse_head_weights(wq6, wk6, wv6)
    out6 = jax.block_until_ready(head_forward(x, w6, H))
    ref6 = _reference(x, wq6, wk6, wv6, H)
    assert out6.shape == (B, T, NH * H)
    assert jnp.allclose(out6, ref6, atol=2e-2, rtol=2e-2), "fused-head mismatch"

    print("KERNEL_OK")
</pallas_src>

<mosaic_0001>
module attributes {stable_mosaic.version = 11 : i64} {
  func.func @_heads_kernel(%arg0: i32, %arg1: memref<2x128x384xf32, #tpu.memory_space<vmem>>, %arg2: memref<384x192xbf16, #tpu.memory_space<vmem>>, %arg3: memref<2x128x64xf32, #tpu.memory_space<vmem>>) attributes {dimension_semantics = [#tpu.dimension_semantics<parallel>], iteration_bounds = array<i64: 2>, scalar_prefetch = 0 : i64, scratch_operands = 0 : i64, tpu.core_type = #tpu.core_type<tc>, window_params = [{transform_indices = @transform_0, window_bounds = array<i64: 2, 128, 384>}, {pipeline_mode = #tpu.pipeline_mode<synchronous>, transform_indices = @transform_1, window_bounds = array<i64: 384, 192>}, {transform_indices = @transform_2, window_bounds = array<i64: 2, 128, 64>}]} {
    %c0 = arith.constant 0 : index
    %c0_0 = arith.constant 0 : index
    %c0_1 = arith.constant 0 : index
    %0 = vector.load %arg1[%c0, %c0_0, %c0_1] : memref<2x128x384xf32, #tpu.memory_space<vmem>>, vector<2x128x384xf32>
    %1 = arith.truncf %0 : vector<2x128x384xf32> to vector<2x128x384xbf16>
    %2 = vector.shape_cast %1 : vector<2x128x384xbf16> to vector<256x384xbf16>
    %c0_2 = arith.constant 0 : index
    %c0_3 = arith.constant 0 : index
    %3 = vector.load %arg2[%c0_2, %c0_3] : memref<384x192xbf16, #tpu.memory_space<vmem>>, vector<384x192xbf16>
    %cst = arith.constant dense<0.000000e+00> : vector<256x192xf32>
    %4 = tpu.matmul %2, %3, %cst {dimension_numbers = #tpu.dot_dimension_numbers<[1], [0], [0], [1], [0, 0, 1, 1], [], []>} : vector<256x384xbf16>, vector<384x192xbf16>, vector<256x192xf32> -> vector<256x192xf32>
    %5 = vector.extract_strided_slice %4 {offsets = [0, 0], sizes = [256, 64], strides = [1, 1]} : vector<256x192xf32> to vector<256x64xf32>
    %6 = arith.truncf %5 : vector<256x64xf32> to vector<256x64xbf16>
    %7 = vector.shape_cast %6 : vector<256x64xbf16> to vector<2x128x64xbf16>
    %8 = vector.extract_strided_slice %4 {offsets = [0, 64], sizes = [256, 64], strides = [1, 1]} : vector<256x192xf32> to vector<256x64xf32>
    %9 = arith.truncf %8 : vector<256x64xf32> to vector<256x64xbf16>
    %10 = vector.shape_cast %9 : vector<256x64xbf16> to vector<2x128x64xbf16>
    %11 = vector.extract_strided_slice %4 {offsets = [0, 128], sizes = [256, 64], strides = [1, 1]} : vector<256x192xf32> to vector<256x64xf32>
    %12 = arith.truncf %11 : vector<256x64xf32> to vector<256x64xbf16>
    %13 = vector.shape_cast %12 : vector<256x64xbf16> to vector<2x128x64xbf16>
    %14 = tpu.iota {dimensions = array<i32: 0>} : vector<128x128xi32>
    %15 = tpu.iota {dimensions = array<i32: 1>} : vector<128x128xi32>
    %16 = arith.cmpi sle, %15, %14 : vector<128x128xi32>
    %cst_4 = arith.constant 0.000000e+00 : f32
    %cst_5 = arith.constant -1.000000e+30 : f32
    %17 = vector.broadcast %cst_4 : f32 to vector<128x128xf32>
    %18 = vector.broadcast %cst_5 : f32 to vector<128x128xf32>
    %19 = arith.select %16, %17, %18 : vector<128x128xi1>, vector<128x128xf32>
    "tpu.trace_start"() <{level = 10 : i32, message = "bqd,bkd->bqk"}> : () -> ()
    %cst_6 = arith.constant dense<0.000000e+00> : vector<2x128x128xf32>
    %20 = tpu.matmul %7, %10, %cst_6 {dimension_numbers = #tpu.dot_dimension_numbers<[2], [2], [1], [1], [0, 0, 0, 1, 1, 1], [0], [0]>} : vector<2x128x64xbf16>, vector<2x128x64xbf16>, vector<2x128x128xf32> -> vector<2x128x128xf32>
    "tpu.trace_stop"() : () -> ()
    %21 = vector.shape_cast %19 : vector<128x128xf32> to vector<1x128x128xf32>
    %22 = vector.broadcast %21 : vector<1x128x128xf32> to vector<2x128x128xf32>
    %23 = arith.addf %20, %22 : vector<2x128x128xf32>
    %cst_7 = arith.constant dense<0xFF800000> : vector<2x128xf32>
    %24 = vector.multi_reduction <maximumf>, %23, %cst_7 [2] : vector<2x128x128xf32> to vector<2x128xf32>
    %25 = vector.shape_cast %24 : vector<2x128xf32> to vector<2x128x1xf32>
    %26 = vector.broadcast %25 : vector<2x128x1xf32> to vector<2x128x128xf32>
    %27 = arith.subf %23, %26 : vector<2x128x128xf32>
    %28 = math.exp %27 : vector<2x128x128xf32>
    %cst_8 = arith.constant dense<0.000000e+00> : vector<2x128xf32>
    %29 = vector.multi_reduction <add>, %28, %cst_8 [2] : vector<2x128x128xf32> to vector<2x128xf32>
    %30 = vector.shape_cast %29 : vector<2x128xf32> to vector<2x128x1xf32>
    %cst_9 = arith.constant 1.000000e+00 : f32
    %31 = vector.broadcast %cst_9 : f32 to vector<2x128x1xf32>
    %32 = arith.divf %31, %30 : vector<2x128x1xf32>
    %33 = vector.broadcast %32 : vector<2x128x1xf32> to vector<2x128x128xf32>
    %34 = arith.mulf %28, %33 : vector<2x128x128xf32>
    %35 = arith.truncf %34 : vector<2x128x128xf32> to vector<2x128x128xbf16>
    "tpu.trace_start"() <{level = 10 : i32, message = "bqk,bkd->bqd"}> : () -> ()
    %cst_10 = arith.constant dense<0.000000e+00> : vector<2x128x64xf32>
    %36 = tpu.matmul %35, %13, %cst_10 {dimension_numbers = #tpu.dot_dimension_numbers<[2], [1], [1], [2], [0, 0, 0, 1, 1, 2], [0], [0]>} : vector<2x128x128xbf16>, vector<2x128x64xbf16>, vector<2x128x64xf32> -> vector<2x128x64xf32>
    "tpu.trace_stop"() : () -> ()
    %c0_11 = arith.constant 0 : index
    %c0_12 = arith.constant 0 : index
    %c0_13 = arith.constant 0 : index
    %37 = vector.load %arg3[%c0_11, %c0_12, %c0_13] : memref<2x128x64xf32, #tpu.memory_space<vmem>>, vector<2x128x64xf32>
    tpu.vector_store %arg3[%c0_11, %c0_12, %c0_13], %36 {strides = array<i32>} : memref<2x128x64xf32, #tpu.memory_space<vmem>>, vector<2x128x64xf32>,
    return
  }
  func.func @transform_0(%arg0: i32) -> (i32, i32, i32) {
    %c0_i32 = arith.constant 0 : i32
    %c0_i32_0 = arith.constant 0 : i32
    %c0_i32_1 = arith.constant 0 : i32
    return %arg0, %c0_i32, %c0_i32_0 : i32, i32, i32
  }
  func.func @transform_1(%arg0: i32) -> (i32, i32) {
    %c0_i32 = arith.constant 0 : i32
    %c0_i32_0 = arith.constant 0 : i32
    %c0_i32_1 = arith.constant 0 : i32
    return %c0_i32, %c0_i32_0 : i32, i32
  }
  func.func @transform_2(%arg0: i32) -> (i32, i32, i32) {
    %c0_i32 = arith.constant 0 : i32
    %c0_i32_0 = arith.constant 0 : i32
    %c0_i32_1 = arith.constant 0 : i32
    return %arg0, %c0_i32, %c0_i32_0 : i32, i32, i32
  }
}

</mosaic_0001>

<bundles_post_ra>
// kernel: tpu_custom_call.1
= control target key start
LH: loop header
LB: loop body
LE: loop exit
PB: predicated region body
PF: predicated region fallthrough
CT: control target
= control target key end

     0   :  { %7 = vsyncpa [#allocation3], 0  ;;  %s3808_s0 = inlined_call_operand.hbm [shape: f32[4,128,384], index: 0, kind: input, shape index: {}]   ;;  %s3809_s1 = inlined_call_operand.vmem [shape: bf16[384,192], index: 1, kind: input, shape index: {}]   ;;  %s3810_s2 = inlined_call_operand.vmem [shape: f32[4,128,64], index: 2, kind: output, shape index: {}]  }
   0x1   :  { %9 = vsyncpa [#allocation3 + $0x1], 0  ;;  %s2741_s9 = smov 0   ;;  %s2743_s10 = smov 0  }
   0x2   :  { %s2745_s11 = smov 0   ;;  %s2747_s12 = smov 0  }
   0x3 LB: > { %s2041_s13 = sadd.s32 4294967295, %s2718_s12   ;;  %s2761_s14 = sadd.s32 1, %s2718_s12   ;;  %s2718_s12 = sphi %s2747_s12, %s3817_s12   ;;  %s2714_s11 = sphi %s2745_s11, %s3816_s11   ;;  %s2710_s10 = sphi %s2743_s10, %s3815_s10   ;;  %s2706_s9 = sphi %s2741_s9, %s3814_s9  }
   0x4   : > { %s19_s15 = ssub.s32 %s2718_s12, %s2761_s14  ;;  %s22_s16 = sadd.s32 1, %s2714_s11 }
   0x5   : > { %p20_p0 = scmp.eq.s32.totalorder %s19_s15, 0  ;;  %p29_p1 = scmp.ne.s32.totalorder %s2714_s11, %s2710_s10 }
   0x6   : > { %p30_p2 = scmp.eq.s32.totalorder %s2718_s12, 0  ;;  %p35_p3 = scmp.ne.s32.totalorder %s2710_s10, %s2706_s9 }
   0x7   : > { %s2771_s17 = scalar_select %p20_p0, %s2714_s11, %s22_s16  }
   0x8   : > { %p31_p4 = por %p30_p2, %p29_p1  ;;  %p36_p5 = scmp.eq.s32.totalorder %s2041_s13, 0 }
   0x9   : > { %p2416_p6 = scmp.lt.s32.totalorder %s2718_s12, 2  ;;  %s109_s19 = sand.u32 1, %s2714_s11  }
   0xa   : > { %p2776_p7 = por %p36_p5, %p35_p3  ;;  %s2407_s20 = smul.u32 768, %s109_s19 }
   0xb   : > { %s2408_s21 = smul.u32 12288, %s2718_s12  ;;  %p2782_p8 = pnand %p2416_p6, %p31_p4 }
   0xc   : > { %s113_s26 = scalar_lea.vmem [#allocation2], %s2407_s20  ;;  %s2794_s28 = scalar_lea.sflag [#allocation3], %s109_s19 }
   0xd   : > { %s2789_s25 = scalar_lea.hbm %s3808_s0, %s2408_s21  ;;  %s121_s27 = sshll.u32 %s113_s26, 4  ;;  %s2791_s27 = int_to_ptr.vmem [resolvable:$true] %s121_s27 }
   0xe   : > { %s2654_s29 = scalar_lea.hbm %s2789_s25, 12288  ;;  %p2656_p11 = pneg %p2782_p8 }
   0xf   : > { %p2655_p10 = scmp.ne.s32.totalorder %s2789_s25, %s2654_s29  ;;  %s2659_s4 = scalar_lea.hbm %s3808_s0, 24576 }
  0x10   : > { %p2660_p0 = scmp.lt.u32.totalorder %s2789_s25, %s3808_s0  ;;  %p2661_p1 = scmp.lt.u32.totalorder %s2659_s4, %s2654_s29 }
  0x11   : > { %p2657_p12 = pnand %p2656_p11, %p2655_p10  ;;  %p2663_p3 = scmp.lt.u32.totalorder %s2654_s29, %s2789_s25 }
  0x12   : > { %p2662_p2 = por %p2661_p1, %p2660_p0 }
  0x13   : > { %p2658_p13 = pneg %p2657_p12 }
  0x14   : > { %p2664_p4 = por %p2663_p3, %p2662_p2 }
  0x16   : > { %p2665_p5 = pnand %p2664_p4, %p2658_p13 }
  0x18   : > { %2668 = shalt.err (!%p2665_p5)
}
  0x19   : > { %s2669_s7 = scalar_lea.vmem %s2791_s27, 12288  ;;  %s2720_s8 = smov [#allocation2]  }
  0x1a   : > { %p2670_p6 = scmp.ne.s32.totalorder %s2791_s27, %s2669_s7  ;;  %s2674_s9 = sshll.u32 %s2720_s8, 4  ;;  %s2675_s9 = int_to_ptr.vmem [resolvable:$false] %s2674_s9 }
  0x1b   : > { %s2676_s15 = scalar_lea.vmem %s2675_s9, 24576  ;;  %p2677_p9 = scmp.lt.s32.totalorder %s2791_s27, %s2675_s9 }
  0x1c   : > { %p2672_p10 = pnand %p2670_p6, %p2656_p11  ;;  %p2678_p0 = scmp.lt.s32.totalorder %s2676_s15, %s2669_s7 }
  0x1e   : > { %p2673_p12 = pneg %p2672_p10  ;;  %p2679_p1 = por %p2678_p0, %p2677_p9 }
  0x20   : > { %p2680_p2 = pnand %p2679_p1, %p2673_p12 }
  0x22   : > { %2683 = shalt.err (!%p2680_p2)
}
  0x23   : > { %s2721_s16 = smov 384   ;;  %s2722_s19 = smov 24  }
  0x24   : > { %2415 = dma.hbm_to_vmem [thread:$0]  (!%p2782_p8), %s2789_s25, 12288, %s2791_s27, %s2794_s28, %s2721_s16, %s2721_s16, %s2722_s19  }
  0x25   : > { %p129_p11 = scmp.lt.s32.totalorder %s2718_s12, 3  ;;  %p3813_p13 = scmp.ge.s32.totalorder %s2718_s12, 1 }
  0x27   : > { %p130_p3 = pnand %p3813_p13, %p129_p11 }
  0x28   : > { %s135_s20 = sand.u32 (!%p130_p3), 1, %s2710_s10  }
  0x29   : > { %133 = sbr.rel (%p130_p3) target bundleno = 1476 (0x5c4), region = 28  ;;  %s136_s23 = scalar_lea.sflag (!%p130_p3), [#allocation3], %s135_s20 }
  0x2a   : > { %s2409_s21 = smul.u32 (!%p130_p3), 768, %s135_s20 }
  0x2c   : > { %s2826_s24 = scalar_lea.vmem (!%p130_p3), [#allocation2], %s2409_s21 }
  0x30   : > { %2701 = dma.done.wait (%p2776_p7), %s136_s23, 12288  }
  0x31   : > { %2703 = vsyncadd (%p2776_p7), %s136_s23, 4294955008  ;;  %v2723_v0 = vmov 0   ;;  %v2454_v1 = vld [vmem:[%s3809_s1 + $0x4] ss:$8 sps:$4 sm:$0xff]   ;;  %v2456_v2 = vld [vmem:[%s3809_s1] ss:$8 sps:$4 sm:$0xff]  }
  0x32   : > { %907 = vmatprep.mubr.bf16.mxu1 %v2723_v0  ;;  %602 = vmatprep.subr.bf16.mxu0 %v2454_v1  ;;  %v2457_v3 = vld [vmem:[%s3809_s1 + $0x14] ss:$8 sps:$4 sm:$0xff]   ;;  %v2459_v4 = vld [vmem:[%s3809_s1 + $0x10] ss:$8 sps:$4 sm:$0xff]   ;;  %v2460_v5 = vld [vmem:[%s3809_s1 + $0x24] ss:$8 sps:$4 sm:$0xff]  }
  0x33   : > { %603 = vmatpush1.bf16.msra.mxu0 %v2456_v2  ;;  %v2462_v6 = vld [vmem:[%s3809_s1 + $0x20] ss:$8 sps:$4 sm:$0xff]   ;;  %v2463_v7 = vld [vmem:[%s3809_s1 + $0x34] ss:$8 sps:$4 sm:$0xff]   ;;  %v2465_v8 = vld [vmem:[%s3809_s1 + $0x30] ss:$8 sps:$4 sm:$0xff]  }
  0x34   : > { %604 = vmatprep.subr.bf16.mxu0 %v2457_v3  ;;  %v2466_v9 = vld [vmem:[%s3809_s1 + $0x44] ss:$8 sps:$4 sm:$0xff]   ;;  %v2468_v10 = vld [vmem:[%s3809_s1 + $0x40] ss:$8 sps:$4 sm:$0xff]   ;;  %v2469_v11 = vld [vmem:[%s3809_s1 + $0x54] ss:$8 sps:$4 sm:$0xff]  }
  0x35   : > { %v2471_v12 = vld [vmem:[%s3809_s1 + $0x50] ss:$8 sps:$4 sm:$0xff]   ;;  %v2472_v13 = vld [vmem:[%s3809_s1 + $0x64] ss:$8 sps:$4 sm:$0xff]   ;;  %v2474_v16 = vld [vmem:[%s3809_s1 + $0x60] ss:$8 sps:$4 sm:$0xff]  }
  0x36   : > { %v171_v14 = vld [vmem:[%s2826_s24 + $0x8] sm:$0xff]  ;;  %v174_v15 = vld [vmem:[%s2826_s24 + $0x20] sm:$0xff]  ;;  %v2475_v20 = vld [vmem:[%s3809_s1 + $0x74] ss:$8 sps:$4 sm:$0xff]   ;;  %vm1095_vm0 = vcmask 523264   ;;  %s2049_s7 = sshll.u32 %s2041_s13, 1 }
  0x37   : > { %605 = vmatpush1.bf16.msra.mxu0 %v2459_v4  ;;  %v267_v17 = vpack.c.bf16 %v174_v15, %v171_v14  ;;  %v2880_v18 = vld [vmem:[%s3809_s1 + $0x100] ss:$8 sps:$4 sm:$0xff]   ;;  %v2885_v19 = vld [vmem:[%s3809_s1 + $0x104] ss:$8 sps:$4 sm:$0xff]   ;;  %v2477_v21 = vld [vmem:[%s3809_s1 + $0x70] ss:$8 sps:$4 sm:$0xff]  }
  0x38   : > { %606 = vmatprep.subr.bf16.mxu0 %v2460_v5  ;;  %2311 = vmatprep.subr.bf16.mxu1 %v2885_v19  ;;  %v2898_v22 = vld [vmem:[%s3809_s1 + $0x110] ss:$8 sps:$4 sm:$0xff]   ;;  %v2903_v23 = vld [vmem:[%s3809_s1 + $0x114] ss:$8 sps:$4 sm:$0xff]   ;;  %v2478_v24 = vld [vmem:[%s3809_s1 + $0x84] ss:$8 sps:$4 sm:$0xff]  }
  0x39   : > { %634 = vmatprep.mubr.bf16.mxu0 %v267_v17  ;;  %2319 = vmatpush1.bf16.msra.mxu1 %v2880_v18  ;;  %v2480_v25 = vld [vmem:[%s3809_s1 + $0x80] ss:$8 sps:$4 sm:$0xff]   ;;  %v2921_v27 = vld [vmem:[%s3809_s1 + $0x124] ss:$8 sps:$4 sm:$0xff]   ;;  %v2481_v28 = vld [vmem:[%s3809_s1 + $0x94] ss:$8 sps:$4 sm:$0xff]  }
  0x3a   : > { %2312 = vmatprep.subr.bf16.mxu1 %v2903_v23  ;;  %v2916_v26 = vld [vmem:[%s3809_s1 + $0x120] ss:$8 sps:$4 sm:$0xff]   ;;  %v2931_v29 = vld [vmem:[%s3809_s1 + $0x134] ss:$8 sps:$4 sm:$0xff]   ;;  %v2936_v30 = vld [vmem:[%s3809_s1 + $0x130] ss:$8 sps:$4 sm:$0xff]  }
  0x3b   : > { %607 = vmatpush1.bf16.msra.mxu0 %v2462_v6  ;;  %v2483_v31 = vld [vmem:[%s3809_s1 + $0x90] ss:$8 sps:$4 sm:$0xff]   ;;  %v2484_v32 = vld [vmem:[%s3809_s1 + $0xa4] ss:$8 sps:$4 sm:$0xff]   ;;  %v2954_v34 = vld [vmem:[%s3809_s1 + $0x140] ss:$8 sps:$4 sm:$0xff]  }
  0x3c   : > { %608 = vmatprep.subr.bf16.mxu0 %v2463_v7  ;;  %v2948_v33 = vld [vmem:[%s3809_s1 + $0x144] ss:$8 sps:$4 sm:$0xff]   ;;  %v2486_v35 = vld [vmem:[%s3809_s1 + $0xa0] ss:$8 sps:$4 sm:$0xff]   ;;  %v2963_v36 = vld [vmem:[%s3809_s1 + $0x154] ss:$8 sps:$4 sm:$0xff]  }
  0x3d   : > { %2320 = vmatpush1.bf16.msra.mxu1 %v2898_v22  ;;  %v2487_v37 = vld [vmem:[%s3809_s1 + $0xb4] ss:$8 sps:$4 sm:$0xff]   ;;  %v2972_v38 = vld [vmem:[%s3809_s1 + $0x150] ss:$8 sps:$4 sm:$0xff]   ;;  %v2981_v40 = vld [vmem:[%s3809_s1 + $0x164] ss:$8 sps:$4 sm:$0xff]  }
  0x3e   : > { %2313 = vmatprep.subr.bf16.mxu1 %v2921_v27  ;;  %v2489_v39 = vld [vmem:[%s3809_s1 + $0xb0] ss:$8 sps:$4 sm:$0xff]   ;;  %v2490_v41 = vld [vmem:[%s3809_s1 + $0xc4] ss:$8 sps:$4 sm:$0xff]   ;;  %v2990_v42 = vld [vmem:[%s3809_s1 + $0x160] ss:$8 sps:$4 sm:$0xff]  }
  0x3f   : > { %609 = vmatpush1.bf16.msra.mxu0 %v2465_v8  ;;  %v2492_v43 = vld [vmem:[%s3809_s1 + $0xc0] ss:$8 sps:$4 sm:$0xff]   ;;  %v2999_v44 = vld [vmem:[%s3809_s1 + $0x174] ss:$8 sps:$4 sm:$0xff]   ;;  %v3008_v46 = vld [vmem:[%s3809_s1 + $0x170] ss:$8 sps:$4 sm:$0xff]  }
  0x40   : > { %610 = vmatprep.subr.bf16.mxu0 %v2466_v9  ;;  %v2493_v45 = vld [vmem:[%s3809_s1 + $0xd4] ss:$8 sps:$4 sm:$0xff]   ;;  %v223_v48 = vld [vmem:[%s2826_s24 + $0x1a8] sm:$0xff]  ;;  %v2495_v49 = vld [vmem:[%s3809_s1 + $0xd0] ss:$8 sps:$4 sm:$0xff]   ;;  %p163_p7 = scmp.lt.s32.totalorder %s2049_s7, 3 }
  0x41   : > { %2321 = vmatpush1.bf16.msra.mxu1 %v2916_v26  ;;  %v220_v47 = vld [vmem:[%s2826_s24 + $0x190] sm:$0xff]  ;;  %v2496_v50 = vld [vmem:[%s3809_s1 + $0xe4] ss:$8 sps:$4 sm:$0xff]   ;;  %v2498_v52 = vld [vmem:[%s3809_s1 + $0xe0] ss:$8 sps:$4 sm:$0xff]  }
  0x42   : > { %2314 = vmatprep.subr.bf16.mxu1 %v2931_v29  ;;  %v292_v51 = vpack.c.bf16 %v223_v48, %v220_v47  ;;  %v2499_v53 = vld [vmem:[%s3809_s1 + $0xf4] ss:$8 sps:$4 sm:$0xff]   ;;  %v226_v54 = vld [vmem:[%s2826_s24 + $0x1c0] sm:$0xff]  ;;  %v2501_v56 = vld [vmem:[%s3809_s1 + $0xf0] ss:$8 sps:$4 sm:$0xff]   ;;  %s3819_s7 = smov (!%p163_p7, %s2049_s7), 3 }
  0x43   : > { %611 = vmatpush1.bf16.msra.mxu0 %v2468_v10  ;;  %v229_v55 = vld [vmem:[%s2826_s24 + $0x1d8] sm:$0xff]  ;;  %v170_v57 = vld [vmem:[%s2826_s24] sm:$0xff]  ;;  %v180_v60 = vld [vmem:[%s2826_s24 + $0x50] sm:$0xff]  ;;  %s2118_s8 = sshll.u32 %s3819_s7, 7 }
  0x44   : > { %612 = vmatprep.subr.bf16.mxu0 %v2469_v11  ;;  %v173_v58 = vld [vmem:[%s2826_s24 + $0x18] sm:$0xff]  ;;  %v295_v61 = vpack.c.bf16 %v229_v55, %v226_v54  ;;  %v232_v1 = vld [vmem:[%s2826_s24 + $0x1f0] sm:$0xff]  ;;  %v235_v2 = vld [vmem:[%s2826_s24 + $0x208] sm:$0xff]  ;;  %s3729_s16 = scalar_lea.vmem %s3810_s2, %s2118_s8 }
  0x45   : > { %2322 = vmatpush1.bf16.msra.mxu1 %v2936_v30  ;;  %v177_v59 = vld [vmem:[%s2826_s24 + $0x38] sm:$0xff]  ;;  %v266_v62 = vpack.c.bf16 %v173_v58, %v170_v57  ;;  %v176_v3 = vld [vmem:[%s2826_s24 + $0x30] sm:$0xff]  ;;  %v179_v4 = vld [vmem:[%s2826_s24 + $0x48] sm:$0xff]  ;;  %v298_v7 = vpack.c.bf16 %v235_v2, %v232_v1 }
  0x46   : > { %2315 = vmatprep.subr.bf16.mxu1 %v2948_v33  ;;  %v270_v63 = vpack.c.bf16 %v180_v60, %v177_v59  ;;  %v183_v5 = vld [vmem:[%s2826_s24 + $0x68] sm:$0xff]  ;;  %v186_v6 = vld [vmem:[%s2826_s24 + $0x80] sm:$0xff]  ;;  %v269_v8 = vpack.c.bf16 %v179_v4, %v176_v3  ;;  %v241_v11 = vld [vmem:[%s2826_s24 + $0x238] sm:$0xff] }
  0x47   : > { %613 = vmatpush1.bf16.msra.mxu0 %v2471_v12  ;;  %v273_v9 = vpack.c.bf16 %v186_v6, %v183_v5  ;;  %v238_v10 = vld [vmem:[%s2826_s24 + $0x220] sm:$0xff]  ;;  %v189_v14 = vld [vmem:[%s2826_s24 + $0x98] sm:$0xff]  ;;  %v192_v15 = vld [vmem:[%s2826_s24 + $0xb0] sm:$0xff] }
  0x48   : > { %614 = vmatprep.subr.bf16.mxu0 %v2472_v13  ;;  %v182_v12 = vld [vmem:[%s2826_s24 + $0x60] sm:$0xff]  ;;  %v185_v13 = vld [vmem:[%s2826_s24 + $0x78] sm:$0xff]  ;;  %v212_v55 = vld [vmem:[%s2826_s24 + $0x150] sm:$0xff] }
  0x49   : > { %2323 = vmatpush1.bf16.msra.mxu1 %v2954_v34  ;;  %v272_v17 = vpack.c.bf16 %v185_v13, %v182_v12  ;;  %v265_v47 = vld [vmem:[%s2826_s24 + $0x2f8] sm:$0xff]  ;;  %v206_v48 = vld [vmem:[%s2826_s24 + $0x120] sm:$0xff]  ;;  %v219_v57 = vld [vmem:[%s2826_s24 + $0x188] sm:$0xff] }
  0x4a   : > { %2316 = vmatprep.subr.bf16.mxu1 %v2963_v36  ;;  %v222_v58 = vld [vmem:[%s2826_s24 + $0x1a0] sm:$0xff]  ;;  %v228_v1 = vld [vmem:[%s2826_s24 + $0x1d0] sm:$0xff]  ;;  %v227_v5 = vld [vmem:[%s2826_s24 + $0x1c8] sm:$0xff] }
  0x4b   : > { %615 = vmatpush1.bf16.msra.mxu0 %v2474_v16  ;;  %v301_v16 = vpack.c.bf16 %v241_v11, %v238_v10  ;;  %v291_v60 = vpack.c.bf16 %v222_v58, %v219_v57  ;;  %v224_v4 = vld [vmem:[%s2826_s24 + $0x1b0] sm:$0xff]  ;;  %v231_v6 = vld [vmem:[%s2826_s24 + $0x1e8] sm:$0xff]  ;;  %v230_v10 = vld [vmem:[%s2826_s24 + $0x1e0] sm:$0xff] }
  0x4c   : > { %616 = vmatprep.subr.bf16.mxu0 %v2475_v20  ;;  %v247_v20 = vld [vmem:[%s2826_s24 + $0x268] sm:$0xff]  ;;  %v233_v11 = vld [vmem:[%s2826_s24 + $0x1f8] sm:$0xff]  ;;  %v240_v13 = vld [vmem:[%s2826_s24 + $0x230] sm:$0xff] }
  0x4d   : > { %2324 = vmatpush1.bf16.msra.mxu1 %v2972_v38  ;;  %v237_v12 = vld [vmem:[%s2826_s24 + $0x218] sm:$0xff]  ;;  %v202_v58 = vld [vmem:[%s2826_s24 + $0x100] sm:$0xff] }
  0x4e   : > { %2317 = vmatprep.subr.bf16.mxu1 %v2981_v40 }
  0x4f   : > { %617 = vmatpush1.bf16.msra.mxu0 %v2477_v21  ;;  %v188_v21 = vld [vmem:[%s2826_s24 + $0x90] sm:$0xff] }
  0x50   : > { %618 = vmatprep.subr.bf16.mxu0 %v2478_v24  ;;  %v198_v24 = vld [vmem:[%s2826_s24 + $0xe0] sm:$0xff] }
  0x51   : > { %2325 = vmatpush1.bf16.msra.mxu1 %v2990_v42 }
  0x52   : > { %2318 = vmatprep.subr.bf16.mxu1 %v2999_v44 }
  0x53   : > { %619 = vmatpush1.bf16.msra.mxu0 %v2480_v25 }
  0x54   : > { %620 = vmatprep.subr.bf16.mxu0 %v2481_v28  ;;  %v250_v28 = vld [vmem:[%s2826_s24 + $0x280] sm:$0xff] }
  0x55   : > { %2326 = vmatpush1.bf16.msra.mxu1 %v3008_v46 }
  0x57   : > { %621 = vmatpush1.bf16.msra.mxu0 %v2483_v31  ;;  %v197_v31 = vld [vmem:[%s2826_s24 + $0xd8] sm:$0xff] }
  0x58   : > { %622 = vmatprep.subr.bf16.mxu0 %v2484_v32  ;;  %908 = vmatmul.mubr.bf16.vlgmr.msra.gmra.mrb[0].mxu1 %v292_v51  ;;  %v201_v32 = vld [vmem:[%s2826_s24 + $0xf8] sm:$0xff]  ;;  %v216_v51 = vld [vmem:[%s2826_s24 + $0x170] sm:$0xff] }
  0x59   : > { %917 = vmatprep.mubr.bf16.mxu1 %v2723_v0 }
  0x5b   : > { %623 = vmatpush1.bf16.msra.mxu0 %v2486_v35 }
  0x5c   : > { %624 = vmatprep.subr.bf16.mxu0 %v2487_v37  ;;  %v256_v37 = vld [vmem:[%s2826_s24 + $0x2b0] sm:$0xff] }
  0x5f   : > { %625 = vmatpush1.bf16.msra.mxu0 %v2489_v39  ;;  %v200_v39 = vld [vmem:[%s2826_s24 + $0xf0] sm:$0xff] }
  0x60   : > { %626 = vmatprep.subr.bf16.mxu0 %v2490_v41  ;;  %918 = vmatmul.mubr.bf16.gmra.mrb[4].mxu1 %v295_v61  ;;  %v207_v41 = vld [vmem:[%s2826_s24 + $0x128] sm:$0xff]  ;;  %v218_v61 = vld [vmem:[%s2826_s24 + $0x180] sm:$0xff] }
  0x61   : > { %927 = vmatprep.mubr.bf16.mxu1 %v2723_v0 }
  0x63   : > { %627 = vmatpush1.bf16.msra.mxu0 %v2492_v43 }
  0x64   : > { %628 = vmatprep.subr.bf16.mxu0 %v2493_v45 }
  0x67   : > { %629 = vmatpush1.bf16.msra.mxu0 %v2495_v49  ;;  %v209_v49 = vld [vmem:[%s2826_s24 + $0x138] sm:$0xff] }
  0x68   : > { %630 = vmatprep.subr.bf16.mxu0 %v2496_v50  ;;  %928 = vmatmul.mubr.bf16.gmra.mrb[8].mxu1 %v298_v7  ;;  %v213_v50 = vld [vmem:[%s2826_s24 + $0x158] sm:$0xff]  ;;  %v234_v7 = vld [vmem:[%s2826_s24 + $0x200] sm:$0xff] }
  0x69   : > { %937 = vmatprep.mubr.bf16.mxu1 %v2723_v0  ;;  %v288_v54 = vpack.c.bf16 %v216_v51, %v213_v50  ;;  %v187_v50 = vld [vmem:[%s2826_s24 + $0x88] sm:$0xff] }
  0x6b   : > { %631 = vmatpush1.bf16.msra.mxu0 %v2498_v52 }
  0x6c   : > { %632 = vmatprep.subr.bf16.mxu0 %v2499_v53  ;;  %v284_v53 = vpack.c.bf16 %v209_v49, %v206_v48  ;;  %v184_v49 = vld [vmem:[%s2826_s24 + $0x70] sm:$0xff] }
  0x6d   : > { %v274_v51 = vpack.c.bf16 %v187_v50, %v184_v49 }
  0x6f   : > { %633 = vmatpush1.bf16.msra.mxu0 %v2501_v56  ;;  %v215_v56 = vld [vmem:[%s2826_s24 + $0x168] sm:$0xff] }
  0x70   : > { %795 = vmatprep.subr.bf16.mxu0 %v2885_v19  ;;  %938 = vmatmul.mubr.bf16.gmra.mrb[12].mxu1 %v301_v16  ;;  %v244_v19 = vld [vmem:[%s2826_s24 + $0x250] sm:$0xff]  ;;  %v287_v59 = vpack.c.bf16 %v215_v56, %v212_v55  ;;  %v199_v56 = vld [vmem:[%s2826_s24 + $0xe8] sm:$0xff] }
  0x71   : > { %947 = vmatprep.mubr.bf16.mxu1 %v2723_v0  ;;  %v304_v25 = vpack.c.bf16 %v247_v20, %v244_v19  ;;  %v236_v16 = vld [vmem:[%s2826_s24 + $0x210] sm:$0xff]  ;;  %v246_v19 = vld [vmem:[%s2826_s24 + $0x260] sm:$0xff] }
  0x72   : > { %635 = vmatmul.mubr.bf16.vlgmr.msra.gmra.mrb[0].mxu0 %v266_v62  ;;  %v221_v62 = vld [vmem:[%s2826_s24 + $0x198] sm:$0xff]  ;;  %v196_v55 = vld [vmem:[%s2826_s24 + $0xd0] sm:$0xff] }
  0x73   : > { %796 = vmatpush1.bf16.msra.mxu0 %v2880_v18  ;;  %644 = vmatprep.mubr.bf16.mxu0 %v270_v63  ;;  %v276_v18 = vpack.c.bf16 %v192_v15, %v189_v14  ;;  %v225_v63 = vld [vmem:[%s2826_s24 + $0x1b8] sm:$0xff]  ;;  %v290_v2 = vpack.c.bf16 %v221_v62, %v218_v61  ;;  %v296_v14 = vpack.c.bf16 %v233_v11, %v230_v10  ;;  %v208_v61 = vld [vmem:[%s2826_s24 + $0x130] sm:$0xff]  ;;  %v211_v62 = vld [vmem:[%s2826_s24 + $0x148] sm:$0xff] }
  0x74   : > { %797 = vmatprep.subr.bf16.mxu0 %v2903_v23  ;;  %v195_v23 = vld [vmem:[%s2826_s24 + $0xc8] sm:$0xff]  ;;  %v294_v3 = vpack.c.bf16 %v228_v1, %v225_v63  ;;  %v300_v15 = vpack.c.bf16 %v240_v13, %v237_v12  ;;  %v280_v57 = vpack.c.bf16 %v199_v56, %v196_v55  ;;  %v286_v63 = vpack.c.bf16 %v211_v62, %v208_v61  ;;  %v214_v1 = vld [vmem:[%s2826_s24 + $0x160] sm:$0xff] }
  0x77   : > { %798 = vmatpush1.bf16.msra.mxu0 %v2898_v22  ;;  %v191_v22 = vld [vmem:[%s2826_s24 + $0xa8] sm:$0xff] }
  0x78   : > { %799 = vmatprep.subr.bf16.mxu0 %v2921_v27  ;;  %v279_v27 = vpack.c.bf16 %v198_v24, %v195_v23  ;;  %948 = vmatmul.mubr.bf16.gmra.mrb[16].mxu1 %v304_v25  ;;  %v245_v23 = vld [vmem:[%s2826_s24 + $0x258] sm:$0xff]  ;;  %v252_v25 = vld [vmem:[%s2826_s24 + $0x290] sm:$0xff] }
  0x79   : > { %957 = vmatprep.mubr.bf16.mxu1 %v2723_v0  ;;  %v249_v24 = vld [vmem:[%s2826_s24 + $0x278] sm:$0xff] }
  0x7a   : > { %645 = vmatmul.mubr.bf16.gmra.mrb[4].mxu0 %v269_v8  ;;  %v293_v8 = vpack.c.bf16 %v227_v5, %v224_v4 }
  0x7b   : > { %654 = vmatprep.mubr.bf16.mxu0 %v273_v9  ;;  %800 = vmatpush1.bf16.msra.mxu0 %v2916_v26  ;;  %v275_v26 = vpack.c.bf16 %v191_v22, %v188_v21  ;;  %v297_v9 = vpack.c.bf16 %v234_v7, %v231_v6  ;;  %v242_v22 = vld [vmem:[%s2826_s24 + $0x240] sm:$0xff] }
  0x7c   : > { %801 = vmatprep.subr.bf16.mxu0 %v2931_v29  ;;  %v253_v29 = vld [vmem:[%s2826_s24 + $0x298] sm:$0xff] }
  0x7f   : > { %802 = vmatpush1.bf16.msra.mxu0 %v2936_v30  ;;  %v194_v30 = vld [vmem:[%s2826_s24 + $0xc0] sm:$0xff] }
  0x80   : > { %803 = vmatprep.subr.bf16.mxu0 %v2948_v33  ;;  %v204_v33 = vld [vmem:[%s2826_s24 + $0x110] sm:$0xff]  ;;  %v278_v35 = vpack.c.bf16 %v197_v31, %v194_v30  ;;  %v255_v30 = vld [vmem:[%s2826_s24 + $0x2a8] sm:$0xff]  ;;  %v258_v31 = vld [vmem:[%s2826_s24 + $0x2c0] sm:$0xff] }
  0x82   : > { %655 = vmatmul.mubr.bf16.gmra.mrb[8].mxu0 %v272_v17  ;;  %v239_v17 = vld [vmem:[%s2826_s24 + $0x228] sm:$0xff] }
  0x83   : > { %664 = vmatprep.mubr.bf16.mxu0 %v276_v18  ;;  %804 = vmatpush1.bf16.msra.mxu0 %v2954_v34  ;;  %v307_v34 = vpack.c.bf16 %v253_v29, %v250_v28  ;;  %v243_v18 = vld [vmem:[%s2826_s24 + $0x248] sm:$0xff]  ;;  %v299_v20 = vpack.c.bf16 %v239_v17, %v236_v16  ;;  %v248_v28 = vld [vmem:[%s2826_s24 + $0x270] sm:$0xff] }
  0x84   : > { %805 = vmatprep.subr.bf16.mxu0 %v2963_v36  ;;  %v282_v36 = vpack.c.bf16 %v204_v33, %v201_v32  ;;  %v303_v21 = vpack.c.bf16 %v246_v19, %v243_v18  ;;  %v251_v29 = vld [vmem:[%s2826_s24 + $0x288] sm:$0xff]  ;;  %v309_v33 = vpack.c.bf16 %v258_v31, %v255_v30 }
  0x85   : > { %958 = vmatmul.mubr.bf16.gmra.mrb[20].mxu1 %v307_v34  ;;  %v305_v32 = vpack.c.bf16 %v251_v29, %v248_v28  ;;  %v254_v34 = vld [vmem:[%s2826_s24 + $0x2a0] sm:$0xff] }
  0x86   : > { %967 = vmatprep.mubr.bf16.mxu1 %v2723_v0 }
  0x87   : > { %806 = vmatpush1.bf16.msra.mxu0 %v2972_v38  ;;  %v259_v38 = vld [vmem:[%s2826_s24 + $0x2c8] sm:$0xff] }
  0x88   : > { %807 = vmatprep.subr.bf16.mxu0 %v2981_v40  ;;  %v203_v40 = vld [vmem:[%s2826_s24 + $0x108] sm:$0xff]  ;;  %v310_v43 = vpack.c.bf16 %v259_v38, %v256_v37  ;;  %v264_v37 = vld [vmem:[%s2826_s24 + $0x2f0] sm:$0xff] }
  0x8a   : > { %665 = vmatmul.mubr.bf16.gmra.mrb[12].mxu0 %v275_v26  ;;  %v302_v26 = vpack.c.bf16 %v245_v23, %v242_v22 }
  0x8b   : > { %674 = vmatprep.mubr.bf16.mxu0 %v279_v27  ;;  %808 = vmatpush1.bf16.msra.mxu0 %v2990_v42  ;;  %v210_v42 = vld [vmem:[%s2826_s24 + $0x140] sm:$0xff]  ;;  %v306_v27 = vpack.c.bf16 %v252_v25, %v249_v24 }
  0x8c   : > { %809 = vmatprep.subr.bf16.mxu0 %v2999_v44  ;;  %v281_v44 = vpack.c.bf16 %v203_v40, %v200_v39  ;;  %v285_v45 = vpack.c.bf16 %v210_v42, %v207_v41  ;;  %v260_v40 = vld [vmem:[%s2826_s24 + $0x2d0] sm:$0xff]  ;;  %v263_v41 = vld [vmem:[%s2826_s24 + $0x2e8] sm:$0xff] }
  0x8d   : > { %968 = vmatmul.mubr.bf16.gmra.mrb[24].mxu1 %v310_v43  ;;  %v311_v42 = vpack.c.bf16 %v263_v41, %v260_v40  ;;  %v172_v43 = vld [vmem:[%s2826_s24 + $0x10] sm:$0xff] }
  0x8e   : > { %977 = vmatprep.mubr.bf16.mxu1 %v2723_v0 }
  0x8f   : > { %810 = vmatpush1.bf16.msra.mxu0 %v3008_v46  ;;  %v262_v46 = vld [vmem:[%s2826_s24 + $0x2e0] sm:$0xff] }
  0x90   : > { %v313_v52 = vpack.c.bf16 %v265_v47, %v262_v46  ;;  %v178_v46 = vld [vmem:[%s2826_s24 + $0x40] sm:$0xff]  ;;  %v181_v47 = vld [vmem:[%s2826_s24 + $0x58] sm:$0xff] }
  0x91   : > { %v271_v48 = vpack.c.bf16 %v181_v47, %v178_v46 }
  0x92   : > { %675 = vmatmul.mubr.bf16.gmra.mrb[16].mxu0 %v278_v35  ;;  %v257_v35 = vld [vmem:[%s2826_s24 + $0x2b8] sm:$0xff] }
  0x93   : > { %684 = vmatprep.mubr.bf16.mxu0 %v282_v36  ;;  %v261_v36 = vld [vmem:[%s2826_s24 + $0x2d8] sm:$0xff]  ;;  %v308_v38 = vpack.c.bf16 %v257_v35, %v254_v34 }
  0x94   : > { %v312_v39 = vpack.c.bf16 %v264_v37, %v261_v36 }
  0x95   : > { %978 = vmatmul.mubr.bf16.gmra.mrb[28].mxu1 %v313_v52  ;;  %v190_v52 = vld [vmem:[%s2826_s24 + $0xa0] sm:$0xff] }
  0x9a   : > { %685 = vmatmul.mubr.bf16.gmra.mrb[20].mxu0 %v281_v44  ;;  %v175_v44 = vld [vmem:[%s2826_s24 + $0x28] sm:$0xff] }
  0x9b   : > { %694 = vmatprep.mubr.bf16.mxu0 %v285_v45  ;;  %v268_v45 = vpack.c.bf16 %v175_v44, %v172_v43 }
  0xa2   : > { %695 = vmatmul.mubr.bf16.gmra.mrb[24].mxu0 %v284_v53  ;;  %v193_v53 = vld [vmem:[%s2826_s24 + $0xb8] sm:$0xff] }
  0xa3   : > { %704 = vmatprep.mubr.bf16.mxu0 %v288_v54  ;;  %v277_v54 = vpack.c.bf16 %v193_v53, %v190_v52 }
  0xaa   : > { %705 = vmatmul.mubr.bf16.gmra.mrb[28].mxu0 %v287_v59  ;;  %v205_v59 = vld [vmem:[%s2826_s24 + $0x118] sm:$0xff] }
  0xab   : > { %714 = vmatprep.mubr.bf16.mxu0 %v291_v60  ;;  %v283_v60 = vpack.c.bf16 %v205_v59, %v202_v58 }
  0xb2   : > { %715 = vmatmul.mubr.bf16.gmra.mrb[32].mxu0 %v290_v2  ;;  %v217_v2 = vld [vmem:[%s2826_s24 + $0x178] sm:$0xff]  ;;  %s2724_s24 = smov 64  }
  0xb3   : > { %724 = vmatprep.mubr.bf16.mxu0 %v294_v3  ;;  %v289_v3 = vpack.c.bf16 %v217_v2, %v214_v1 }
  0xba   : > { %725 = vmatmul.mubr.bf16.gmra.mrb[36].mxu0 %v293_v8 }
  0xbb   : > { %734 = vmatprep.mubr.bf16.mxu0 %v297_v9 }
  0xc2   : > { %735 = vmatmul.mubr.bf16.gmra.mrb[40].mxu0 %v296_v14 }
  0xc3   : > { %744 = vmatprep.mubr.bf16.mxu0 %v300_v15 }
  0xca   : > { %745 = vmatmul.mubr.bf16.gmra.mrb[44].mxu0 %v299_v20 }
  0xcb   : > { %754 = vmatprep.mubr.bf16.mxu0 %v303_v21 }
  0xd2   : > { %755 = vmatmul.mubr.bf16.gmra.mrb[48].mxu0 %v302_v26 }
  0xd3   : > { %764 = vmatprep.mubr.bf16.mxu0 %v306_v27 }
  0xda   : > { %765 = vmatmul.mubr.bf16.gmra.mrb[52].mxu0 %v305_v32 }
  0xdb   : > { %774 = vmatprep.mubr.bf16.mxu0 %v309_v33 }
  0xe2   : > { %775 = vmatmul.mubr.bf16.gmra.mrb[56].mxu0 %v308_v38 }
  0xe3   : > { %784 = vmatprep.mubr.bf16.mxu0 %v312_v39 }
  0xea   : > { %785 = vmatmul.mubr.bf16.gmra.mrb[60].mxu0 %v311_v42 }
  0xeb   : > { %827 = vmatprep.mubr.bf16.mxu0 %v2723_v0 }
  0xf2   : > { %828 = vmatmul.mubr.bf16.vlgmr.msra.gmra.mrb[0].mxu0 %v268_v45 }
  0xf3   : > { %837 = vmatprep.mubr.bf16.mxu0 %v2723_v0 }
  0xfa   : > { %838 = vmatmul.mubr.bf16.gmra.mrb[4].mxu0 %v271_v48 }
  0xfb   : > { %847 = vmatprep.mubr.bf16.mxu0 %v2723_v0 }
 0x102   : > { %848 = vmatmul.mubr.bf16.gmra.mrb[8].mxu0 %v274_v51 }
 0x103   : > { %857 = vmatprep.mubr.bf16.mxu0 %v2723_v0 }
 0x10a   : > { %858 = vmatmul.mubr.bf16.gmra.mrb[12].mxu0 %v277_v54 }
 0x10b   : > { %867 = vmatprep.mubr.bf16.mxu0 %v2723_v0 }
 0x112   : > { %868 = vmatmul.mubr.bf16.gmra.mrb[16].mxu0 %v280_v57 }
 0x113   : > { %877 = vmatprep.mubr.bf16.mxu0 %v2723_v0 }
 0x11a   : > { %878 = vmatmul.mubr.bf16.gmra.mrb[20].mxu0 %v283_v60 }
 0x11b   : > { %887 = vmatprep.mubr.bf16.mxu0 %v2723_v0 }
 0x122   : > { %888 = vmatmul.mubr.bf16.gmra.mrb[24].mxu0 %v286_v63 }
 0x123   : > { %897 = vmatprep.mubr.bf16.mxu0 %v2723_v0 }
 0x12a   : > { %898 = vmatmul.mubr.bf16.gmra.mrb[28].mxu0 %v289_v3 }
 0x12b   : > { %v909_v4 = vpop.f32.mrb[0].mxu1 }
 0x12c   : > { %v911_v5 = vpop.f32.mrb[1].mxu1 }
 0x12d   : > { %v913_v6 = vpop.f32.mrb[2].mxu1 }
 0x12e   : > { %v915_v7 = vpop.f32.mrb[3].mxu1 }
 0x133   : > { %v919_v8 = vpop.f32.mrb[4].mxu1 }
 0x134   : > { %v921_v9 = vpop.f32.mrb[5].mxu1 }
 0x135   : > { %v923_v10 = vpop.f32.mrb[6].mxu1 }
 0x136   : > { %v925_v11 = vpop.f32.mrb[7].mxu1 }
 0x13b   : > { %v929_v12 = vpop.f32.mrb[8].mxu1 }
 0x13c   : > { %v931_v13 = vpop.f32.mrb[9].mxu1 }
 0x13d   : > { %v933_v14 = vpop.f32.mrb[10].mxu1 }
 0x13e   : > { %v935_v15 = vpop.f32.mrb[11].mxu1 }
 0x143   : > { %v939_v16 = vpop.f32.mrb[12].mxu1 }
 0x144   : > { %v941_v17 = vpop.f32.mrb[13].mxu1 }
 0x145   : > { %v943_v18 = vpop.f32.mrb[14].mxu1 }
 0x146   : > { %v945_v0 = vpop.f32.mrb[15].mxu1 }
 0x14b   : > { %v949_v19 = vpop.f32.mrb[16].mxu1 }
 0x14c   : > { %v951_v20 = vpop.f32.mrb[17].mxu1 }
 0x14d   : > { %v953_v21 = vpop.f32.mrb[18].mxu1 }
 0x14e   : > { %v955_v22 = vpop.f32.mrb[19].mxu1 }
 0x158   : > { %v3152_v23 = vpop.f32.mrb[20].mxu1 }
 0x159   : > { %v3154_v24 = vpop.f32.mrb[21].mxu1 }
 0x15a   : > { %v3156_v25 = vpop.f32.mrb[22].mxu1 }
 0x15b   : > { %v3158_v26 = vpop.f32.mrb[23].mxu1 }
 0x160   : > { %v3160_v27 = vpop.f32.mrb[24].mxu1 }
 0x161   : > { %v3162_v28 = vpop.f32.mrb[25].mxu1 }
 0x162   : > { %v3164_v29 = vpop.f32.mrb[26].mxu1 }
 0x163   : > { %v3166_v30 = vpop.f32.mrb[27].mxu1 }
 0x168   : > { %v3168_v31 = vpop.f32.mrb[28].mxu1 }
 0x169   : > { %v3170_v32 = vpop.f32.mrb[29].mxu1 }
 0x16a   : > { %v3172_v33 = vpop.f32.mrb[30].mxu1 }
 0x16b   : > { %v3174_v34 = vpop.f32.mrb[31].mxu1 }
 0x185   : > { %v716_v35 = vpop.f32.mrb[32].mxu0 }
 0x186   : > { %v910_v36 = vadd.f32 %v909_v4, %v716_v35  ;;  %v718_v37 = vpop.f32.mrb[33].mxu0 }
 0x187   : > { %v912_v38 = vadd.f32 %v911_v5, %v718_v37  ;;  %v720_v39 = vpop.f32.mrb[34].mxu0 }
 0x188   : > { %v914_v40 = vadd.f32 %v913_v6, %v720_v39  ;;  %v722_v41 = vpop.f32.mrb[35].mxu0 }
 0x189   : > { %v916_v42 = vadd.f32 %v915_v7, %v722_v41 }
 0x18a   : > { %v3176_v43 = vpack.c.bf16 %v914_v40, %v910_v36 }
 0x18b   : > { %v3178_v44 = vpack.c.bf16 %v916_v42, %v912_v38 }
 0x18d   : > { %v726_v45 = vpop.f32.mrb[36].mxu0 }
 0x18e   : > { %v920_v46 = vadd.f32 %v919_v8, %v726_v45  ;;  %v728_v47 = vpop.f32.mrb[37].mxu0 }
 0x18f   : > { %v922_v48 = vadd.f32 %v921_v9, %v728_v47  ;;  %v730_v49 = vpop.f32.mrb[38].mxu0 }
 0x190   : > { %v924_v50 = vadd.f32 %v923_v10, %v730_v49  ;;  %v732_v51 = vpop.f32.mrb[39].mxu0 }
 0x191   : > { %v926_v52 = vadd.f32 %v925_v11, %v732_v51 }
 0x192   : > { %v3180_v53 = vpack.c.bf16 %v924_v50, %v920_v46 }
 0x193   : > { %v3182_v54 = vpack.c.bf16 %v926_v52, %v922_v48 }
 0x195   : > { %v736_v55 = vpop.f32.mrb[40].mxu0 }
 0x196   : > { %v930_v56 = vadd.f32 %v929_v12, %v736_v55  ;;  %v738_v57 = vpop.f32.mrb[41].mxu0 }
 0x197   : > { %v932_v58 = vadd.f32 %v931_v13, %v738_v57  ;;  %v740_v59 = vpop.f32.mrb[42].mxu0 }
 0x198   : > { %v934_v60 = vadd.f32 %v933_v14, %v740_v59  ;;  %v742_v61 = vpop.f32.mrb[43].mxu0 }
 0x199   : > { %v936_v62 = vadd.f32 %v935_v15, %v742_v61 }
 0x19a   : > { %v3184_v63 = vpack.c.bf16 %v934_v60, %v930_v56 }
 0x19b   : > { %v3186_v1 = vpack.c.bf16 %v936_v62, %v932_v58 }
 0x19d   : > { %v746_v2 = vpop.f32.mrb[44].mxu0 }
 0x19e   : > { %v940_v3 = vadd.f32 %v939_v16, %v746_v2  ;;  %v748_v4 = vpop.f32.mrb[45].mxu0 }
 0x19f   : > { %v942_v5 = vadd.f32 %v941_v17, %v748_v4  ;;  %v750_v6 = vpop.f32.mrb[46].mxu0 }
 0x1a0   : > { %v944_v7 = vadd.f32 %v943_v18, %v750_v6  ;;  %v752_v8 = vpop.f32.mrb[47].mxu0 }
 0x1a1   : > { %v946_v9 = vadd.f32 %v945_v0, %v752_v8 }
 0x1a2   : > { %v3188_v10 = vpack.c.bf16 %v944_v7, %v940_v3 }
 0x1a3   : > { %v3190_v11 = vpack.c.bf16 %v946_v9, %v942_v5 }
 0x1a5   : > { %v756_v12 = vpop.f32.mrb[48].mxu0 }
 0x1a6   : > { %v950_v13 = vadd.f32 %v949_v19, %v756_v12  ;;  %v758_v14 = vpop.f32.mrb[49].mxu0 }
 0x1a7   : > { %v952_v15 = vadd.f32 %v951_v20, %v758_v14  ;;  %v760_v35 = vpop.f32.mrb[50].mxu0 }
 0x1a8   : > { %v954_v36 = vadd.f32 %v953_v21, %v760_v35  ;;  %v762_v37 = vpop.f32.mrb[51].mxu0 }
 0x1a9   : > { %v956_v38 = vadd.f32 %v955_v22, %v762_v37 }
 0x1aa   : > { %v3192_v39 = vpack.c.bf16 %v954_v36, %v950_v13 }
 0x1ab   : > { %v3194_v16 = vpack.c.bf16 %v956_v38, %v952_v15 }
 0x1ad   : > { %v766_v17 = vpop.f32.mrb[52].mxu0 }
 0x1ae   : > { %v960_v18 = vadd.f32 %v3152_v23, %v766_v17  ;;  %v768_v0 = vpop.f32.mrb[53].mxu0 }
 0x1af   : > { %v962_v40 = vadd.f32 %v3154_v24, %v768_v0  ;;  %v770_v41 = vpop.f32.mrb[54].mxu0 }
 0x1b0   : > { %v964_v42 = vadd.f32 %v3156_v25, %v770_v41  ;;  %v772_v19 = vpop.f32.mrb[55].mxu0 }
 0x1b1   : > { %v966_v20 = vadd.f32 %v3158_v26, %v772_v19 }
 0x1b2   : > { %v3200_v45 = vpack.c.bf16 %v964_v42, %v960_v18 }
 0x1b3   : > { %v3202_v21 = vpack.c.bf16 %v966_v20, %v962_v40 }
 0x1b5   : > { %v776_v22 = vpop.f32.mrb[56].mxu0 }
 0x1b6   : > { %v970_v46 = vadd.f32 %v3160_v27, %v776_v22  ;;  %v778_v47 = vpop.f32.mrb[57].mxu0 }
 0x1b7   : > { %v972_v48 = vadd.f32 %v3162_v28, %v778_v47  ;;  %v780_v23 = vpop.f32.mrb[58].mxu0 }
 0x1b8   : > { %v974_v49 = vadd.f32 %v3164_v29, %v780_v23  ;;  %v782_v24 = vpop.f32.mrb[59].mxu0 }
 0x1b9   : > { %v976_v50 = vadd.f32 %v3166_v30, %v782_v24 }
 0x1ba   : > { %v3208_v25 = vpack.c.bf16 %v974_v49, %v970_v46 }
 0x1bb   : > { %v3210_v51 = vpack.c.bf16 %v976_v50, %v972_v48 }
 0x1bd   : > { %v786_v26 = vpop.f32.mrb[60].mxu0 }
 0x1be   : > { %v980_v52 = vadd.f32 %v3168_v31, %v786_v26  ;;  %v788_v55 = vpop.f32.mrb[61].mxu0 }
 0x1bf   : > { %v982_v56 = vadd.f32 %v3170_v32, %v788_v55  ;;  %v790_v27 = vpop.f32.mrb[62].mxu0 }
 0x1c0   : > { %v984_v57 = vadd.f32 %v3172_v33, %v790_v27  ;;  %v792_v28 = vpop.f32.mrb[63].mxu0 }
 0x1c1   : > { %v986_v58 = vadd.f32 %v3174_v34, %v792_v28 }
 0x1c2   : > { %v3216_v29 = vpack.c.bf16 %v984_v57, %v980_v52 }
 0x1c3   : > { %v3218_v59 = vpack.c.bf16 %v986_v58, %v982_v56 }
 0x1c5   : > { %v829_v30 = vpop.f32.mrb[0].mxu0 }
 0x1c6   : > { %v831_v60 = vpop.f32.mrb[1].mxu0 }
 0x1c7   : > { %v833_v61 = vpop.f32.mrb[2].mxu0 }
 0x1c8   : > { %v988_v62 = vpack.c.bf16 %v833_v61, %v829_v30  ;;  %v835_v2 = vpop.f32.mrb[3].mxu0 }
 0x1c9   : > { %v3220_v31 = vpack.c.bf16 %v835_v2, %v831_v60 }
 0x1ca   : > { %1079 = vrot.lane.b32.xlu0 %v988_v62, %s2724_s24  ;;  %2199 = vmatprep.mubr.msk.bf16.mxu1 %vm1095_vm0, %v988_v62 }
 0x1cd   : > { %v839_v32 = vpop.f32.mrb[4].mxu0 }
 0x1ce   : > { %v841_v33 = vpop.f32.mrb[5].mxu0 }
 0x1cf   : > { %v843_v34 = vpop.f32.mrb[6].mxu0 }
 0x1d0   : > { %v3224_v3 = vpack.c.bf16 %v843_v34, %v839_v32  ;;  %v845_v4 = vpop.f32.mrb[7].mxu0 }
 0x1d1   : > { %v3226_v5 = vpack.c.bf16 %v845_v4, %v841_v33 }
 0x1d2   : > { %1081 = vrot.lane.b32.xlu0 %v3224_v3, %s2724_s24 }
 0x1d5   : > { %v849_v6 = vpop.f32.mrb[8].mxu0 }
 0x1d6   : > { %v851_v7 = vpop.f32.mrb[9].mxu0 }
 0x1d7   : > { %v853_v8 = vpop.f32.mrb[10].mxu0 }
 0x1d8   : > { %v3230_v9 = vpack.c.bf16 %v853_v8, %v849_v6  ;;  %v855_v12 = vpop.f32.mrb[11].mxu0 }
 0x1d9   : > { %v3232_v13 = vpack.c.bf16 %v855_v12, %v851_v7 }
 0x1da   : > { %1083 = vrot.lane.b32.xlu1 %v3230_v9, %s2724_s24 }
 0x1dd   : > { %v859_v14 = vpop.f32.mrb[12].mxu0 }
 0x1de   : > { %v861_v15 = vpop.f32.mrb[13].mxu0 }
 0x1df   : > { %v863_v35 = vpop.f32.mrb[14].mxu0 }
 0x1e0   : > { %v3236_v36 = vpack.c.bf16 %v863_v35, %v859_v14  ;;  %v865_v37 = vpop.f32.mrb[15].mxu0 }
 0x1e1   : > { %v3238_v38 = vpack.c.bf16 %v865_v37, %v861_v15 }
 0x1e2   : > { %1085 = vrot.lane.b32.xlu1 %v3236_v36, %s2724_s24 }
 0x1e5   : > { %v869_v17 = vpop.f32.mrb[16].mxu0 }
 0x1e6   : > { %v871_v18 = vpop.f32.mrb[17].mxu0 }
 0x1e7   : > { %v873_v0 = vpop.f32.mrb[18].mxu0 }
 0x1e8   : > { %v3242_v40 = vpack.c.bf16 %v873_v0, %v869_v17  ;;  %v875_v41 = vpop.f32.mrb[19].mxu0 }
 0x1e9   : > { %v3244_v42 = vpack.c.bf16 %v875_v41, %v871_v18 }
 0x1ea   : > { %1087 = vrot.lane.b32.xlu0 %v3242_v40, %s2724_s24 }
 0x1ed   : > { %v879_v19 = vpop.f32.mrb[20].mxu0 }
 0x1ee   : > { %v881_v20 = vpop.f32.mrb[21].mxu0 }
 0x1ef   : > { %v883_v22 = vpop.f32.mrb[22].mxu0 }
 0x1f0   : > { %v3248_v46 = vpack.c.bf16 %v883_v22, %v879_v19  ;;  %v885_v47 = vpop.f32.mrb[23].mxu0 }
 0x1f1   : > { %v3250_v48 = vpack.c.bf16 %v885_v47, %v881_v20 }
 0x1f2   : > { %1089 = vrot.lane.b32.xlu1 %v3248_v46, %s2724_s24 }
 0x1f5   : > { %v889_v23 = vpop.f32.mrb[24].mxu0 }
 0x1f6   : > { %v891_v49 = vpop.f32.mrb[25].mxu0 }
 0x1f7   : > { %v893_v24 = vpop.f32.mrb[26].mxu0 }
 0x1f8   : > { %v3254_v50 = vpack.c.bf16 %v893_v24, %v889_v23  ;;  %v895_v26 = vpop.f32.mrb[27].mxu0 }
 0x1f9   : > { %v3256_v52 = vpack.c.bf16 %v895_v26, %v891_v49 }
 0x1fa   : > { %1091 = vrot.lane.b32.xlu0 %v3254_v50, %s2724_s24 }
 0x1fd   : > { %v899_v55 = vpop.f32.mrb[28].mxu0 }
 0x1fe   : > { %1249 = vrot.lane.b32.xlu0 %v3176_v43, %s2724_s24  ;;  %v901_v56 = vpop.f32.mrb[29].mxu0 }
 0x1ff   : > { %v903_v27 = vpop.f32.mrb[30].mxu0 }
 0x200   : > { %v3262_v57 = vpack.c.bf16 %v903_v27, %v899_v55  ;;  %v905_v28 = vpop.f32.mrb[31].mxu0 }
 0x201   : > { %v3264_v58 = vpack.c.bf16 %v905_v28, %v901_v56 }
 0x202   : > { %1253 = vrot.lane.b32.xlu0 %v3184_v63, %s2724_s24  ;;  %1093 = vrot.lane.b32.xlu1 %v3262_v57, %s2724_s24 }
 0x206   : > { %1257 = vrot.lane.b32.xlu0 %v3192_v39, %s2724_s24  ;;  %1251 = vrot.lane.b32.xlu1 %v3180_v53, %s2724_s24 }
 0x20a   : > { %1261 = vrot.lane.b32.xlu0 %v3208_v25, %s2724_s24  ;;  %1255 = vrot.lane.b32.xlu1 %v3188_v10, %s2724_s24 }
 0x20e   : > { %1259 = vrot.lane.b32.xlu1 %v3200_v45, %s2724_s24 }
 0x212   : > { %1263 = vrot.lane.b32.xlu1 %v3216_v29, %s2724_s24 }
 0x23c   : > { %v1080_v30 = vpop.permute.xlu0 %1079 }
 0x23d   : > { %v1121_v60 = vsel %vm1095_vm0, %v1080_v30, 0  ;;  %2391 = vmatprep.subr.msk.bf16.mxu1 %vm1095_vm0, %v1080_v30 }
 0x23e   : > { %2184 = vmatpush3.bf16.xpose.msra.mxu1 %v1121_v60 }
 0x244   : > { %v1082_v61 = vpop.permute.xlu0 %1081 }
 0x245   : > { %v1124_v62 = vsel %vm1095_vm0, %v1082_v61, 0  ;;  %2392 = vmatprep.subr.msk.bf16.mxu1 %vm1095_vm0, %v1082_v61 }
 0x246   : > { %2186 = vmatpush3.bf16.xpose.msra.mxu1 %v1124_v62 }
 0x24c   : > { %v1084_v2 = vpop.permute.xlu1 %1083 }
 0x24d   : > { %v1127_v32 = vsel %vm1095_vm0, %v1084_v2, 0  ;;  %2393 = vmatprep.subr.msk.bf16.mxu1 %vm1095_vm0, %v1084_v2 }
 0x24e   : > { %2188 = vmatpush3.bf16.xpose.msra.mxu1 %v1127_v32 }
 0x254   : > { %v1086_v33 = vpop.permute.xlu1 %1085 }
 0x255   : > { %v1130_v34 = vsel %vm1095_vm0, %v1086_v33, 0  ;;  %2394 = vmatprep.subr.msk.bf16.mxu1 %vm1095_vm0, %v1086_v33 }
 0x256   : > { %2190 = vmatpush3.bf16.xpose.msra.mxu1 %v1130_v34 }
 0x25c   : > { %v1088_v4 = vpop.permute.xlu0 %1087 }
 0x25d   : > { %v1133_v6 = vsel %vm1095_vm0, %v1088_v4, 0  ;;  %2395 = vmatprep.subr.msk.bf16.mxu1 %vm1095_vm0, %v1088_v4 }
 0x25e   : > { %2192 = vmatpush3.bf16.xpose.msra.mxu1 %v1133_v6 }
 0x264   : > { %v1090_v7 = vpop.permute.xlu1 %1089 }
 0x265   : > { %v1136_v8 = vsel %vm1095_vm0, %v1090_v7, 0  ;;  %2396 = vmatprep.subr.msk.bf16.mxu1 %vm1095_vm0, %v1090_v7 }
 0x266   : > { %2194 = vmatpush3.bf16.xpose.msra.mxu1 %v1136_v8 }
 0x26c   : > { %v1092_v12 = vpop.permute.xlu0 %1091 }
 0x26d   : > { %v1139_v14 = vsel %vm1095_vm0, %v1092_v12, 0  ;;  %2397 = vmatprep.subr.msk.bf16.mxu1 %vm1095_vm0, %v1092_v12 }
 0x26e   : > { %2196 = vmatpush3.bf16.xpose.msra.mxu1 %v1139_v14 }
 0x270   : > { %v1250_v37 = vpop.permute.xlu0 %1249 }
 0x271   : > { %v1290_v17 = vsel %vm1095_vm0, %v1250_v37, 0 }
 0x274   : > { %v1094_v15 = vpop.permute.xlu1 %1093  ;;  %v1254_v41 = vpop.permute.xlu0 %1253 }
 0x275   : > { %v1142_v35 = vsel %vm1095_vm0, %v1094_v15, 0  ;;  %2398 = vmatprep.subr.msk.bf16.mxu1 %vm1095_vm0, %v1094_v15 }
 0x276   : > { %2198 = vmatpush3.bf16.xpose.msra.mxu1 %v1142_v35 }
 0x277   : > { %2399 = vmatprep.subr.msk.bf16.mxu1 %vm1095_vm0, %v1250_v37 }
 0x278   : > { %v1252_v18 = vpop.permute.xlu1 %1251 }
 0x279   : > { %v1293_v0 = vsel %vm1095_vm0, %v1252_v18, 0 }
 0x27d   : > { %2200 = vmatmul.mubr.msk.bf16.vlgmr.msra.gmra.mrb[32].mxu1 %vm1095_vm0, %v3224_v3  ;;  %v1296_v3 = vsel %vm1095_vm0, %v1254_v41, 0 }
 0x27e   : > { %2203 = vmatprep.mubr.msk.bf16.mxu1 %vm1095_vm0, %v3230_v9  ;;  %2216 = vmatpush3.bf16.xpose.msra.mxu1 %v1290_v17  ;;  %v1256_v9 = vpop.permute.xlu1 %1255 }
 0x27f   : > { %2400 = vmatprep.subr.msk.bf16.mxu1 %vm1095_vm0, %v1252_v18 }
 0x282   : > { %v1260_v20 = vpop.permute.xlu1 %1259 }
 0x283   : > { %v1305_v22 = vsel %vm1095_vm0, %v1260_v20, 0 }
 0x285   : > { %2204 = vmatmul.mubr.msk.bf16.gmra.mrb[36].mxu1 %vm1095_vm0, %v3236_v36  ;;  %v1299_v36 = vsel %vm1095_vm0, %v1256_v9, 0 }
 0x286   : > { %2207 = vmatprep.mubr.msk.bf16.mxu1 %vm1095_vm0, %v3242_v40  ;;  %2218 = vmatpush3.bf16.xpose.msra.mxu1 %v1293_v0  ;;  %v1258_v40 = vpop.permute.xlu0 %1257  ;;  %v1264_v23 = vpop.permute.xlu1 %1263 }
 0x287   : > { %2401 = vmatprep.subr.msk.bf16.mxu1 %vm1095_vm0, %v1254_v41  ;;  %v1302_v19 = vsel %vm1095_vm0, %v1258_v40, 0 }
 0x28d   : > { %2208 = vmatmul.mubr.msk.bf16.gmra.mrb[40].mxu1 %vm1095_vm0, %v3248_v46  ;;  %v1262_v46 = vpop.permute.xlu0 %1261 }
 0x28e   : > { %2211 = vmatprep.mubr.msk.bf16.mxu1 %vm1095_vm0, %v3254_v50  ;;  %2220 = vmatpush3.bf16.xpose.msra.mxu1 %v1296_v3  ;;  %v1308_v47 = vsel %vm1095_vm0, %v1262_v46, 0 }
 0x28f   : > { %2402 = vmatprep.subr.msk.bf16.mxu1 %vm1095_vm0, %v1256_v9 }
 0x295   : > { %2212 = vmatmul.mubr.msk.bf16.gmra.mrb[44].mxu1 %vm1095_vm0, %v3262_v57 }
 0x296   : > { %2222 = vmatpush3.bf16.xpose.msra.mxu1 %v1299_v36  ;;  %2231 = vmatprep.mubr.msk.bf16.mxu1 %vm1095_vm0, %v3176_v43  ;;  %v1311_v43 = vsel %vm1095_vm0, %v1264_v23, 0 }
 0x297   : > { %2403 = vmatprep.subr.msk.bf16.mxu1 %vm1095_vm0, %v1258_v40 }
 0x29e   : > { %2224 = vmatpush3.bf16.xpose.msra.mxu1 %v1302_v19 }
 0x29f   : > { %2404 = vmatprep.subr.msk.bf16.mxu1 %vm1095_vm0, %v1260_v20 }
 0x2a6   : > { %2226 = vmatpush3.bf16.xpose.msra.mxu1 %v1305_v22 }
 0x2a7   : > { %2405 = vmatprep.subr.msk.bf16.mxu1 %vm1095_vm0, %v1262_v46 }
 0x2ae   : > { %2228 = vmatpush3.bf16.xpose.msra.mxu1 %v1308_v47 }
 0x2af   : > { %2406 = vmatprep.subr.msk.bf16.mxu1 %vm1095_vm0, %v1264_v23 }
 0x2b6   : > { %2230 = vmatpush3.bf16.xpose.msra.mxu1 %v1311_v43 }
 0x2b7   : > { %2247 = vmatprep.subr.bf16.mxu1 %v3220_v31 }
 0x2bd   : > { %2232 = vmatmul.mubr.msk.bf16.vlgmr.msra.gmra.mrb[48].mxu1 %vm1095_vm0, %v3180_v53  ;;  %v1020_v53 = vlaneseq }
 0x2be   : > { %2235 = vmatprep.mubr.msk.bf16.mxu1 %vm1095_vm0, %v3184_v63  ;;  %2248 = vmatpush3.bf16.msra.mxu1 %v3220_v31 }
 0x2bf   : > { %2249 = vmatprep.subr.bf16.mxu1 %v3226_v5  ;;  %v3361_v63 = vshrl.u32 %v1020_v53, 7 }
 0x2c1   : > { %v1024_v31 = vadd.s32 24, %v3361_v63  ;;  %v1026_v55 = vadd.s32 40, %v3361_v63  ;;  %v1029_v30 = vadd.s32 64, %v3361_v63  ;;  %v1031_v4 = vadd.s32 80, %v3361_v63 }
 0x2c2   : > { %2250 = vmatpush3.bf16.msra.mxu1 %v3226_v5  ;;  %v1030_v6 = vadd.s32 72, %v3361_v63  ;;  %v1032_v35 = vadd.s32 88, %v3361_v63  ;;  %v1033_v37 = vadd.s32 96, %v3361_v63  ;;  %v1035_v40 = vadd.s32 112, %v3361_v63 }
 0x2c3   : > { %2251 = vmatprep.subr.bf16.mxu1 %v3232_v13  ;;  %v1034_v19 = vadd.s32 104, %v3361_v63  ;;  %v1036_v43 = vadd.s32 120, %v3361_v63 }
 0x2c5   : > { %2236 = vmatmul.mubr.msk.bf16.gmra.mrb[52].mxu1 %vm1095_vm0, %v3188_v10  ;;  %v3363_v10 = vand.u32 127, %v1020_v53 }
 0x2c6   : > { %2239 = vmatprep.mubr.msk.bf16.mxu1 %vm1095_vm0, %v3192_v39  ;;  %2252 = vmatpush3.bf16.msra.mxu1 %v3232_v13  ;;  %v1022_v39 = vadd.s32 8, %v3361_v63  ;;  %v1025_v13 = vadd.s32 32, %v3361_v63 }
 0x2c7   : > { %2253 = vmatprep.subr.bf16.mxu1 %v3238_v38  ;;  %vm1039_vm1 = vcmp.le.s32.totalorder %v3363_v10, %v3361_v63  ;;  %vm1042_vm4 = vcmp.le.s32.totalorder %v3363_v10, %v1024_v31  ;;  %vm1044_vm7 = vcmp.le.s32.totalorder %v3363_v10, %v1026_v55  ;;  %vm1047_vm9 = vcmp.le.s32.totalorder %v3363_v10, %v1029_v30 }
 0x2c8   : > { %vm1040_vm2 = vcmp.le.s32.totalorder %v3363_v10, %v1022_v39  ;;  %vm1043_vm5 = vcmp.le.s32.totalorder %v3363_v10, %v1025_v13  ;;  %vm1049_vm10 = vcmp.le.s32.totalorder %v3363_v10, %v1031_v4  ;;  %vm1048_vm11 = vcmp.le.s32.totalorder %v3363_v10, %v1030_v6 }
 0x2c9   : > { %vm1050_vm12 = vcmp.le.s32.totalorder %v3363_v10, %v1032_v35  ;;  %vm1051_vm13 = vcmp.le.s32.totalorder %v3363_v10, %v1033_v37  ;;  %vm1053_vm14 = vcmp.le.s32.totalorder %v3363_v10, %v1035_v40  ;;  %vm1052_vm15 = vcmp.le.s32.totalorder %v3363_v10, %v1034_v19 }
 0x2ca   : > { %2254 = vmatpush3.bf16.msra.mxu1 %v3238_v38 }
 0x2cb   : > { %2255 = vmatprep.subr.bf16.mxu1 %v3244_v42 }
 0x2cd   : > { %2240 = vmatmul.mubr.msk.bf16.gmra.mrb[56].mxu1 %vm1095_vm0, %v3200_v45  ;;  %v1023_v45 = vadd.s32 16, %v3361_v63 }
 0x2ce   : > { %2243 = vmatprep.mubr.msk.bf16.mxu1 %vm1095_vm0, %v3208_v25  ;;  %2256 = vmatpush3.bf16.msra.mxu1 %v3244_v42  ;;  %v2725_v25 = vmov -1e+30  }
 0x2cf   : > { %2257 = vmatprep.subr.bf16.mxu1 %v3250_v48  ;;  %vm1041_vm3 = vcmp.le.s32.totalorder %v3363_v10, %v1023_v45  ;;  %v3377_v42 = vsel %vm1040_vm2, 0.0, %v2725_v25  ;;  %v3398_v27 = vsel %vm1042_vm4, 0.0, %v2725_v25  ;;  %v3401_v57 = vsel %vm1043_vm5, 0.0, %v2725_v25 }
 0x2d0   : > { %v3383_v24 = vsel %vm1041_vm3, 0.0, %v2725_v25  ;;  %v3418_v33 = vsel %vm1044_vm7, 0.0, %v2725_v25  ;;  %v3436_v14 = vsel %vm1047_vm9, 0.0, %v2725_v25  ;;  %v1065_v3 = vsel %vm1049_vm10, 0.0, %v2725_v25 }
 0x2d1   : > { %v3452_v9 = vsel %vm1048_vm11, 0.0, %v2725_v25  ;;  %v1066_v46 = vsel %vm1050_vm12, 0.0, %v2725_v25  ;;  %v1067_v47 = vsel %vm1051_vm13, 0.0, %v2725_v25  ;;  %v1068_v13 = vsel %vm1052_vm15, 0.0, %v2725_v25 }
 0x2d2   : > { %2258 = vmatpush3.bf16.msra.mxu1 %v3250_v48 }
 0x2d3   : > { %2259 = vmatprep.subr.bf16.mxu1 %v3256_v52 }
 0x2d5   : > { %2244 = vmatmul.mubr.msk.bf16.gmra.mrb[60].mxu1 %vm1095_vm0, %v3216_v29  ;;  %v3371_v29 = vsel %vm1039_vm1, 0.0, %v2725_v25  ;;  %vm1054_vm1 = vcmp.le.s32.totalorder %v3363_v10, %v1036_v43 }
 0x2d6   : > { %2260 = vmatpush3.bf16.msra.mxu1 %v3256_v52  ;;  %v1027_v52 = vadd.s32 48, %v3361_v63 }
 0x2d7   : > { %2261 = vmatprep.subr.bf16.mxu1 %v3264_v58 }
 0x2d8   : > { %vm1045_vm6 = vcmp.le.s32.totalorder %v3363_v10, %v1027_v52 }
 0x2d9   : > { %v3415_v32 = vsel %vm1045_vm6, 0.0, %v2725_v25 }
 0x2da   : > { %2262 = vmatpush3.bf16.msra.mxu1 %v3264_v58  ;;  %v1028_v58 = vadd.s32 56, %v3361_v63 }
 0x2db   : > { %2279 = vmatprep.subr.bf16.mxu1 %v3178_v44 }
 0x2dc   : > { %vm1046_vm8 = vcmp.le.s32.totalorder %v3363_v10, %v1028_v58 }
 0x2dd   : > { %v3433_v12 = vsel %vm1046_vm8, 0.0, %v2725_v25 }
 0x350   : > { %v2201_v5 = vpop.f32.mrb[32].mxu1 }
 0x351   : > { %v1178_v38 = vpop.f32.mrb[33].mxu1  ;;  %v3394_v56 = vadd.f32 %v2201_v5, %v3383_v24  ;;  %v1069_v5 = vsel %vm1053_vm14, 0.0, %v2725_v25 }
 0x352   : > { %v3380_v48 = vadd.f32 %v1178_v38, %v3371_v29  ;;  %v2202_v49 = vpop.f32.mrb[34].mxu1 }
 0x353   : > { %v1181_v50 = vpop.f32.mrb[35].mxu1  ;;  %v3409_v61 = vadd.f32 %v2202_v49, %v3398_v27 }
 0x354   : > { %v3387_v26 = vadd.f32 %v1181_v50, %v3377_v42  ;;  %1410 = vmax.xlane.f32.xlu0 %v3380_v48  ;;  %v1070_v50 = vsel %vm1054_vm1, 0.0, %v2725_v25 }
 0x356   : > { %1412 = vmax.xlane.f32.xlu1 %v3387_v26 }
 0x358   : > { %v2205_v28 = vpop.f32.mrb[36].mxu1  ;;  %1414 = vmax.xlane.f32.xlu0 %v3394_v56 }
 0x359   : > { %v1194_v60 = vpop.f32.mrb[37].mxu1  ;;  %v3427_v7 = vadd.f32 %v2205_v28, %v3415_v32 }
 0x35a   : > { %v3412_v62 = vadd.f32 %v1194_v60, %v3401_v57  ;;  %v2206_v2 = vpop.f32.mrb[38].mxu1 }
 0x35b   : > { %v1197_v34 = vpop.f32.mrb[39].mxu1  ;;  %v3445_v18 = vadd.f32 %v2206_v2, %v3433_v12 }
 0x35c   : > { %1418 = vmax.xlane.f32.xlu1 %v3412_v62  ;;  %1416 = vmax.xlane.f32.xlu0 %v3409_v61  ;;  %v3430_v8 = vadd.f32 %v1197_v34, %v3418_v33 }
 0x360   : > { %v2209_v15 = vpop.f32.mrb[40].mxu1  ;;  %1422 = vmax.xlane.f32.xlu1 %v3427_v7  ;;  %1420 = vmax.xlane.f32.xlu0 %v3430_v8 }
 0x361   : > { %v1210_v17 = vpop.f32.mrb[41].mxu1  ;;  %v3460_v20 = vadd.f32 %v2209_v15, %v1065_v3 }
 0x362   : > { %v3448_v0 = vadd.f32 %v1210_v17, %v3436_v14  ;;  %v2210_v41 = vpop.f32.mrb[42].mxu1 }
 0x363   : > { %v1213_v36 = vpop.f32.mrb[43].mxu1  ;;  %v3472_v39 = vadd.f32 %v2210_v41, %v1066_v46 }
 0x364   : > { %1426 = vmax.xlane.f32.xlu1 %v3448_v0  ;;  %1424 = vmax.xlane.f32.xlu0 %v3445_v18  ;;  %v3463_v22 = vadd.f32 %v1213_v36, %v3452_v9 }
 0x368   : > { %v2213_v23 = vpop.f32.mrb[44].mxu1  ;;  %1430 = vmax.xlane.f32.xlu1 %v3460_v20  ;;  %1428 = vmax.xlane.f32.xlu0 %v3463_v22 }
 0x369   : > { %v1226_v53 = vpop.f32.mrb[45].mxu1  ;;  %v3481_v63 = vadd.f32 %v2213_v23, %v1069_v5 }
 0x36a   : > { %v3474_v45 = vadd.f32 %v1226_v53, %v1067_v47  ;;  %v2214_v31 = vpop.f32.mrb[46].mxu1 }
 0x36b   : > { %v1229_v38 = vpop.f32.mrb[47].mxu1  ;;  %v3488_v52 = vadd.f32 %v2214_v31, %v1070_v50 }
 0x36c   : > { %1434 = vmax.xlane.f32.xlu1 %v3474_v45  ;;  %1432 = vmax.xlane.f32.xlu0 %v3472_v39  ;;  %v3483_v49 = vadd.f32 %v1229_v38, %v1068_v13 }
 0x370   : > { %1438 = vmax.xlane.f32.xlu1 %v3481_v63  ;;  %1436 = vmax.xlane.f32.xlu0 %v3483_v49 }
 0x374   : > { %1440 = vmax.xlane.f32.xlu0 %v3488_v52 }
 0x390   : > { %v2233_v55 = vpop.f32.mrb[48].mxu1 }
 0x391   : > { %v3492_v10 = vadd.f32 %v2233_v55, %v3383_v24  ;;  %v1347_v28 = vpop.f32.mrb[49].mxu1 }
 0x392   : > { %v3495_v58 = vadd.f32 %v1347_v28, %v3371_v29  ;;  %v2234_v30 = vpop.f32.mrb[50].mxu1 }
 0x393   : > { %v1350_v60 = vpop.f32.mrb[51].mxu1  ;;  %v3503_v2 = vadd.f32 %v2234_v30, %v3398_v27 }
 0x394   : > { %v3498_v25 = vadd.f32 %v1350_v60, %v3377_v42  ;;  %1442 = vmax.xlane.f32.xlu1 %v3495_v58 }
 0x396   : > { %1444 = vmax.xlane.f32.xlu0 %v3498_v25 }
 0x398   : > { %v2237_v34 = vpop.f32.mrb[52].mxu1  ;;  %1446 = vmax.xlane.f32.xlu1 %v3492_v10 }
 0x399   : > { %v3507_v24 = vadd.f32 %v2237_v34, %v3415_v32  ;;  %v1363_v29 = vpop.f32.mrb[53].mxu1 }
 0x39a   : > { %v3510_v4 = vadd.f32 %v1363_v29, %v3401_v57  ;;  %v2238_v6 = vpop.f32.mrb[54].mxu1  ;;  %1448 = vmax.xlane.f32.xlu0 %v3503_v2 }
 0x39b   : > { %v1366_v42 = vpop.f32.mrb[55].mxu1  ;;  %v3519_v27 = vadd.f32 %v2238_v6, %v3433_v12 }
 0x39c   : > { %v3514_v15 = vadd.f32 %v1366_v42, %v3418_v33  ;;  %1450 = vmax.xlane.f32.xlu1 %v3510_v4 }
 0x39e   : > { %1452 = vmax.xlane.f32.xlu0 %v3514_v15 }
 0x3a0   : > { %v2241_v32 = vpop.f32.mrb[56].mxu1  ;;  %1454 = vmax.xlane.f32.xlu1 %v3507_v24 }
 0x3a1   : > { %v3522_v35 = vadd.f32 %v2241_v32, %v1065_v3  ;;  %v1379_v57 = vpop.f32.mrb[57].mxu1 }
 0x3a2   : > { %v3525_v37 = vadd.f32 %v1379_v57, %v3436_v14  ;;  %v2242_v17 = vpop.f32.mrb[58].mxu1  ;;  %1456 = vmax.xlane.f32.xlu0 %v3519_v27 }
 0x3a3   : > { %v1382_v33 = vpop.f32.mrb[59].mxu1  ;;  %v3533_v12 = vadd.f32 %v2242_v17, %v1066_v46 }
 0x3a4   : > { %v3529_v41 = vadd.f32 %v1382_v33, %v3452_v9  ;;  %1458 = vmax.xlane.f32.xlu1 %v3525_v37 }
 0x3a6   : > { %1460 = vmax.xlane.f32.xlu0 %v3529_v41 }
 0x3a8   : > { %v2245_v36 = vpop.f32.mrb[60].mxu1  ;;  %1462 = vmax.xlane.f32.xlu1 %v3522_v35 }
 0x3a9   : > { %v3536_v3 = vadd.f32 %v2245_v36, %v1069_v5  ;;  %v1395_v14 = vpop.f32.mrb[61].mxu1 }
 0x3aa   : > { %v3538_v40 = vadd.f32 %v1395_v14, %v1067_v47  ;;  %v2246_v19 = vpop.f32.mrb[62].mxu1  ;;  %1464 = vmax.xlane.f32.xlu0 %v3533_v12 }
 0x3ab   : > { %v1398_v23 = vpop.f32.mrb[63].mxu1  ;;  %v3545_v46 = vadd.f32 %v2246_v19, %v1070_v50 }
 0x3ac   : > { %v3541_v9 = vadd.f32 %v1398_v23, %v1068_v13  ;;  %1466 = vmax.xlane.f32.xlu1 %v3538_v40 }
 0x3ae   : > { %1468 = vmax.xlane.f32.xlu0 %v3541_v9 }
 0x3b0   : > { %1470 = vmax.xlane.f32.xlu1 %v3536_v3 }
 0x3b2   : > { %1472 = vmax.xlane.f32.xlu0 %v3545_v46 }
 0x3e1   : > { %v1411_v43 = vpop.xlane.xlu0 %1410 }
 0x3e2   : > { %v1474_v47 = vsub.f32 %v3380_v48, %v1411_v43 }
 0x3e3   : > { %v1413_v53 = vpop.xlane.xlu1 %1412 }
 0x3e4   : > { %v1506_v31 = vmul.f32 1.442695, %v1474_v47  ;;  %v1475_v5 = vsub.f32 %v3387_v26, %v1413_v53 }
 0x3e5   : > { %v1415_v38 = vpop.xlane.xlu0 %1414 }
 0x3e6   : > { %2526 = vpow2.f32 %v1506_v31  ;;  %v1508_v13 = vmul.f32 1.442695, %v1475_v5  ;;  %v1476_v55 = vsub.f32 %v3394_v56, %v1415_v38 }
 0x3e8   : > { %2528 = vpow2.f32 %v1508_v13  ;;  %v1510_v28 = vmul.f32 1.442695, %v1476_v55 }
 0x3e9   : > { %v1417_v50 = vpop.xlane.xlu0 %1416  ;;  %v1419_v30 = vpop.xlane.xlu1 %1418 }
 0x3ea   : > { %2530 = vpow2.f32 %v1510_v28  ;;  %v1477_v60 = vsub.f32 %v3409_v61, %v1417_v50  ;;  %v1478_v34 = vsub.f32 %v3412_v62, %v1419_v30 }
 0x3ec   : > { %v1512_v29 = vmul.f32 1.442695, %v1477_v60  ;;  %v1514_v48 = vmul.f32 1.442695, %v1478_v34 }
 0x3ed   : > { %v1421_v6 = vpop.xlane.xlu0 %1420  ;;  %v1423_v42 = vpop.xlane.xlu1 %1422 }
 0x3ee   : > { %2532 = vpow2.f32 %v1512_v29  ;;  %v1479_v26 = vsub.f32 %v3430_v8, %v1421_v6  ;;  %v1480_v32 = vsub.f32 %v3427_v7, %v1423_v42 }
 0x3ef   : > { %2534 = vpow2.f32 %v1514_v48 }
 0x3f0   : > { %v3556_v56 = vpop.eup %2526  ;;  %v1516_v57 = vmul.f32 1.442695, %v1479_v26  ;;  %v1518_v17 = vmul.f32 1.442695, %v1480_v32 }
 0x3f1   : > { %v1425_v33 = vpop.xlane.xlu0 %1424  ;;  %1570 = vadd.xlane.f32.xlu1 %v3556_v56  ;;  %v1427_v61 = vpop.xlane.xlu1 %1426 }
 0x3f2   : > { %v3559_v36 = vpop.eup %2528  ;;  %2536 = vpow2.f32 %v1516_v57  ;;  %v1481_v62 = vsub.f32 %v3445_v18, %v1425_v33  ;;  %v1482_v14 = vsub.f32 %v3448_v0, %v1427_v61 }
 0x3f3   : > { %2538 = vpow2.f32 %v1518_v17  ;;  %1572 = vadd.xlane.f32.xlu0 %v3559_v36 }
 0x3f4   : > { %v3564_v7 = vpop.eup %2530  ;;  %v1520_v8 = vmul.f32 1.442695, %v1481_v62  ;;  %v1522_v19 = vmul.f32 1.442695, %v1482_v14 }
 0x3f5   : > { %v1429_v23 = vpop.xlane.xlu0 %1428  ;;  %1574 = vadd.xlane.f32.xlu1 %v3564_v7  ;;  %v1431_v43 = vpop.xlane.xlu1 %1430 }
 0x3f6   : > { %2540 = vpow2.f32 %v1520_v8  ;;  %v1483_v47 = vsub.f32 %v3463_v22, %v1429_v23  ;;  %v1484_v53 = vsub.f32 %v3460_v20, %v1431_v43 }
 0x3f7   : > { %2542 = vpow2.f32 %v1522_v19 }
 0x3f8   : > { %v3569_v18 = vpop.eup %2532  ;;  %v1524_v0 = vmul.f32 1.442695, %v1483_v47  ;;  %v1526_v31 = vmul.f32 1.442695, %v1484_v53 }
 0x3f9   : > { %v3571_v5 = vpop.eup %2534  ;;  %v1433_v38 = vpop.xlane.xlu0 %1432  ;;  %1576 = vadd.xlane.f32.xlu0 %v3569_v18 }
 0x3fa   : > { %v1435_v13 = vpop.xlane.xlu1 %1434  ;;  %2544 = vpow2.f32 %v1524_v0  ;;  %v1485_v55 = vsub.f32 %v3472_v39, %v1433_v38  ;;  %1578 = vadd.xlane.f32.xlu1 %v3571_v5 }
 0x3fb   : > { %v1486_v22 = vsub.f32 %v3474_v45, %v1435_v13  ;;  %2546 = vpow2.f32 %v1526_v31 }
 0x3fc   : > { %v3577_v20 = vpop.eup %2536  ;;  %v1528_v28 = vmul.f32 1.442695, %v1485_v55 }
 0x3fd   : > { %v1530_v50 = vmul.f32 1.442695, %v1486_v22  ;;  %v3579_v30 = vpop.eup %2538  ;;  %v1437_v60 = vpop.xlane.xlu0 %1436  ;;  %1580 = vadd.xlane.f32.xlu0 %v3577_v20 }
 0x3fe   : > { %v1439_v34 = vpop.xlane.xlu1 %1438  ;;  %2548 = vpow2.f32 %v1528_v28  ;;  %v1487_v29 = vsub.f32 %v3483_v49, %v1437_v60  ;;  %1582 = vadd.xlane.f32.xlu1 %v3579_v30 }
 0x3ff   : > { %v1488_v39 = vsub.f32 %v3481_v63, %v1439_v34  ;;  %2550 = vpow2.f32 %v1530_v50 }
 0x400   : > { %v3585_v45 = vpop.eup %2540  ;;  %v1532_v48 = vmul.f32 1.442695, %v1487_v29 }
 0x401   : > { %v1534_v6 = vmul.f32 1.442695, %v1488_v39  ;;  %v3587_v42 = vpop.eup %2542  ;;  %v1441_v26 = vpop.xlane.xlu0 %1440  ;;  %1584 = vadd.xlane.f32.xlu0 %v3585_v45 }
 0x402   : > { %2552 = vpow2.f32 %v1532_v48  ;;  %v1489_v32 = vsub.f32 %v3488_v52, %v1441_v26  ;;  %1586 = vadd.xlane.f32.xlu1 %v3587_v42 }
 0x403   : > { %2554 = vpow2.f32 %v1534_v6 }
 0x404   : > { %v3592_v49 = vpop.eup %2544  ;;  %v1536_v57 = vmul.f32 1.442695, %v1489_v32 }
 0x405   : > { %v3594_v63 = vpop.eup %2546  ;;  %1588 = vadd.xlane.f32.xlu0 %v3592_v49 }
 0x406   : > { %2556 = vpow2.f32 %v1536_v57  ;;  %1590 = vadd.xlane.f32.xlu1 %v3594_v63 }
 0x408   : > { %v3598_v17 = vpop.eup %2548 }
 0x409   : > { %v3600_v33 = vpop.eup %2550  ;;  %1592 = vadd.xlane.f32.xlu0 %v3598_v17 }
 0x40a   : > { %1594 = vadd.xlane.f32.xlu1 %v3600_v33 }
 0x40c   : > { %v3604_v52 = vpop.eup %2552 }
 0x40d   : > { %v3606_v61 = vpop.eup %2554  ;;  %1596 = vadd.xlane.f32.xlu0 %v3604_v52 }
 0x40e   : > { %1598 = vadd.xlane.f32.xlu1 %v3606_v61 }
 0x410   : > { %v3610_v62 = vpop.eup %2556 }
 0x411   : > { %1600 = vadd.xlane.f32.xlu0 %v3610_v62 }
 0x421   : > { %v1443_v14 = vpop.xlane.xlu1 %1442 }
 0x422   : > { %v1490_v8 = vsub.f32 %v3495_v58, %v1443_v14 }
 0x423   : > { %v1445_v19 = vpop.xlane.xlu0 %1444 }
 0x424   : > { %v1538_v23 = vmul.f32 1.442695, %v1490_v8  ;;  %v1491_v43 = vsub.f32 %v3498_v25, %v1445_v19 }
 0x425   : > { %v1447_v47 = vpop.xlane.xlu1 %1446 }
 0x426   : > { %2558 = vpow2.f32 %v1538_v23  ;;  %v1540_v53 = vmul.f32 1.442695, %v1491_v43  ;;  %v1492_v0 = vsub.f32 %v3492_v10, %v1447_v47 }
 0x427   : > { %v1449_v31 = vpop.xlane.xlu0 %1448 }
 0x428   : > { %2560 = vpow2.f32 %v1540_v53  ;;  %v1542_v38 = vmul.f32 1.442695, %v1492_v0  ;;  %v1493_v13 = vsub.f32 %v3503_v2, %v1449_v31 }
 0x429   : > { %v1451_v55 = vpop.xlane.xlu1 %1450 }
 0x42a   : > { %2562 = vpow2.f32 %v1542_v38  ;;  %v1544_v22 = vmul.f32 1.442695, %v1493_v13  ;;  %v1494_v28 = vsub.f32 %v3510_v4, %v1451_v55 }
 0x42b   : > { %v1453_v58 = vpop.xlane.xlu0 %1452 }
 0x42c   : > { %2564 = vpow2.f32 %v1544_v22  ;;  %v1546_v50 = vmul.f32 1.442695, %v1494_v28  ;;  %v1495_v25 = vsub.f32 %v3514_v15, %v1453_v58 }
 0x42d   : > { %v1455_v60 = vpop.xlane.xlu1 %1454 }
 0x42e   : > { %2566 = vpow2.f32 %v1546_v50  ;;  %v1548_v34 = vmul.f32 1.442695, %v1495_v25  ;;  %v1496_v10 = vsub.f32 %v3507_v24, %v1455_v60 }
 0x42f   : > { %v1457_v29 = vpop.xlane.xlu0 %1456 }
 0x430   : > { %v3620_v39 = vpop.eup %2558  ;;  %2568 = vpow2.f32 %v1548_v34  ;;  %v1550_v2 = vmul.f32 1.442695, %v1496_v10  ;;  %v1497_v48 = vsub.f32 %v3519_v27, %v1457_v29 }
 0x431   : > { %1602 = vadd.xlane.f32.xlu1 %v3620_v39  ;;  %v1459_v4 = vpop.xlane.xlu1 %1458 }
 0x432   : > { %v3624_v6 = vpop.eup %2560  ;;  %2570 = vpow2.f32 %v1550_v2  ;;  %v1552_v26 = vmul.f32 1.442695, %v1497_v48  ;;  %v1498_v15 = vsub.f32 %v3525_v37, %v1459_v4 }
 0x433   : > { %v1461_v32 = vpop.xlane.xlu0 %1460  ;;  %1604 = vadd.xlane.f32.xlu0 %v3624_v6 }
 0x434   : > { %v3628_v24 = vpop.eup %2562  ;;  %2572 = vpow2.f32 %v1552_v26  ;;  %v1554_v57 = vmul.f32 1.442695, %v1498_v15  ;;  %v1499_v14 = vsub.f32 %v3529_v41, %v1461_v32 }
 0x435   : > { %1606 = vadd.xlane.f32.xlu1 %v3628_v24  ;;  %v1463_v27 = vpop.xlane.xlu1 %1462 }
 0x436   : > { %v3632_v8 = vpop.eup %2564  ;;  %2574 = vpow2.f32 %v1554_v57  ;;  %v1556_v19 = vmul.f32 1.442695, %v1499_v14  ;;  %v1500_v23 = vsub.f32 %v3522_v35, %v1463_v27 }
 0x437   : > { %v1465_v43 = vpop.xlane.xlu0 %1464  ;;  %1608 = vadd.xlane.f32.xlu0 %v3632_v8 }
 0x438   : > { %v3636_v37 = vpop.eup %2566  ;;  %2576 = vpow2.f32 %v1556_v19  ;;  %v1558_v47 = vmul.f32 1.442695, %v1500_v23  ;;  %v1501_v53 = vsub.f32 %v3533_v12, %v1465_v43 }
 0x439   : > { %1610 = vadd.xlane.f32.xlu1 %v3636_v37  ;;  %v1467_v41 = vpop.xlane.xlu1 %1466 }
 0x43a   : > { %v3640_v0 = vpop.eup %2568  ;;  %2578 = vpow2.f32 %v1558_v47  ;;  %v1560_v31 = vmul.f32 1.442695, %v1501_v53  ;;  %v1502_v38 = vsub.f32 %v3538_v40, %v1467_v41 }
 0x43b   : > { %v1469_v13 = vpop.xlane.xlu0 %1468  ;;  %1612 = vadd.xlane.f32.xlu0 %v3640_v0 }
 0x43c   : > { %v3644_v35 = vpop.eup %2570  ;;  %2580 = vpow2.f32 %v1560_v31  ;;  %v1562_v55 = vmul.f32 1.442695, %v1502_v38  ;;  %v1503_v22 = vsub.f32 %v3541_v9, %v1469_v13 }
 0x43d   : > { %1614 = vadd.xlane.f32.xlu1 %v3644_v35  ;;  %v1471_v12 = vpop.xlane.xlu1 %1470 }
 0x43e   : > { %v3648_v28 = vpop.eup %2572  ;;  %2582 = vpow2.f32 %v1562_v55  ;;  %v1564_v58 = vmul.f32 1.442695, %v1503_v22  ;;  %v1504_v50 = vsub.f32 %v3536_v3, %v1471_v12 }
 0x43f   : > { %v1473_v25 = vpop.xlane.xlu0 %1472  ;;  %1616 = vadd.xlane.f32.xlu0 %v3648_v28 }
 0x440   : > { %v3652_v40 = vpop.eup %2574  ;;  %2584 = vpow2.f32 %v1564_v58  ;;  %v1566_v60 = vmul.f32 1.442695, %v1504_v50  ;;  %v1505_v34 = vsub.f32 %v3545_v46, %v1473_v25 }
 0x441   : > { %1618 = vadd.xlane.f32.xlu1 %v3652_v40 }
 0x442   : > { %v3656_v9 = vpop.eup %2576  ;;  %2586 = vpow2.f32 %v1566_v60  ;;  %v1568_v10 = vmul.f32 1.442695, %v1505_v34 }
 0x443   : > { %1620 = vadd.xlane.f32.xlu0 %v3656_v9 }
 0x444   : > { %v3659_v29 = vpop.eup %2578  ;;  %2588 = vpow2.f32 %v1568_v10 }
 0x445   : > { %1622 = vadd.xlane.f32.xlu1 %v3659_v29 }
 0x446   : > { %v3662_v3 = vpop.eup %2580 }
 0x447   : > { %1624 = vadd.xlane.f32.xlu0 %v3662_v3 }
 0x448   : > { %v3665_v2 = vpop.eup %2582 }
 0x449   : > { %1626 = vadd.xlane.f32.xlu1 %v3665_v2 }
 0x44a   : > { %v3668_v46 = vpop.eup %2584 }
 0x44b   : > { %1628 = vadd.xlane.f32.xlu0 %v3668_v46 }
 0x44c   : > { %v3671_v48 = vpop.eup %2586 }
 0x44d   : > { %1630 = vadd.xlane.f32.xlu1 %v3671_v48 }
 0x44e   : > { %v3674_v4 = vpop.eup %2588 }
 0x44f   : > { %1632 = vadd.xlane.f32.xlu0 %v3674_v4 }
 0x47e   : > { %v1571_v26 = vpop.xlane.xlu1 %1570 }
 0x47f   : > { %2590 = vrcp.f32 %v1571_v26 }
 0x480   : > { %v1573_v15 = vpop.xlane.xlu0 %1572 }
 0x481   : > { %2592 = vrcp.f32 %v1573_v15 }
 0x482   : > { %v1575_v32 = vpop.xlane.xlu1 %1574 }
 0x483   : > { %2594 = vrcp.f32 %v1575_v32 }
 0x486   : > { %v1577_v57 = vpop.xlane.xlu0 %1576 }
 0x487   : > { %2596 = vrcp.f32 %v1577_v57  ;;  %v1579_v14 = vpop.xlane.xlu1 %1578 }
 0x488   : > { %2598 = vrcp.f32 %v1579_v14 }
 0x489   : > { %v2591_v27 = vpop.eup %2590 }
 0x48a   : > { %v1581_v19 = vpop.xlane.xlu0 %1580  ;;  %v1698_v47 = vmul.f32 %v2591_v27, %v3556_v56 }
 0x48b   : > { %v2593_v23 = vpop.eup %2592  ;;  %2600 = vrcp.f32 %v1581_v19  ;;  %v1583_v43 = vpop.xlane.xlu1 %1582 }
 0x48c   : > { %v1699_v53 = vmul.f32 %v2593_v23, %v3559_v36  ;;  %2602 = vrcp.f32 %v1583_v43 }
 0x48d   : > { %v2595_v38 = vpop.eup %2594 }
 0x48e   : > { %v1585_v41 = vpop.xlane.xlu0 %1584  ;;  %v1730_v31 = vpack.c.bf16 %v1699_v53, %v1698_v47  ;;  %v1700_v22 = vmul.f32 %v2595_v38, %v3564_v7 }
 0x48f   : > { %2604 = vrcp.f32 %v1585_v41  ;;  %v1587_v13 = vpop.xlane.xlu1 %1586 }
 0x490   : > { %2263 = vmatprep.mubr.bf16.mxu1 %v1730_v31  ;;  %2606 = vrcp.f32 %v1587_v13 }
 0x491   : > { %v2597_v55 = vpop.eup %2596 }
 0x492   : > { %v1701_v12 = vmul.f32 %v2597_v55, %v3569_v18  ;;  %v1589_v58 = vpop.xlane.xlu0 %1588  ;;  %v2599_v50 = vpop.eup %2598 }
 0x493   : > { %2608 = vrcp.f32 %v1589_v58  ;;  %v1591_v25 = vpop.xlane.xlu1 %1590  ;;  %v1702_v34 = vmul.f32 %v2599_v50, %v3571_v5 }
 0x494   : > { %v1731_v56 = vpack.c.bf16 %v1701_v12, %v1700_v22  ;;  %2610 = vrcp.f32 %v1591_v25 }
 0x495   : > { %v2601_v60 = vpop.eup %2600 }
 0x496   : > { %v1593_v36 = vpop.xlane.xlu0 %1592  ;;  %2264 = vmatmul.mubr.bf16.vlgmr.msra.gmra.mrb[64].mxu1 %v1731_v56  ;;  %v1703_v10 = vmul.f32 %v2601_v60, %v3577_v20  ;;  %v2603_v26 = vpop.eup %2602 }
 0x497   : > { %2612 = vrcp.f32 %v1593_v36  ;;  %v1595_v15 = vpop.xlane.xlu1 %1594  ;;  %2280 = vmatpush3.bf16.msra.mxu1 %v3178_v44  ;;  %v1704_v57 = vmul.f32 %v2603_v26, %v3579_v30 }
 0x498   : > { %2281 = vmatprep.subr.bf16.mxu1 %v3182_v54  ;;  %v1732_v7 = vpack.c.bf16 %v1703_v10, %v1702_v34  ;;  %2614 = vrcp.f32 %v1595_v15 }
 0x499   : > { %v2605_v18 = vpop.eup %2604 }
 0x49a   : > { %v1597_v32 = vpop.xlane.xlu0 %1596  ;;  %2267 = vmatprep.mubr.bf16.mxu1 %v1732_v7  ;;  %v1705_v14 = vmul.f32 %v2605_v18, %v3585_v45  ;;  %v2607_v27 = vpop.eup %2606 }
 0x49b   : > { %2616 = vrcp.f32 %v1597_v32  ;;  %v1599_v5 = vpop.xlane.xlu1 %1598  ;;  %2282 = vmatpush3.bf16.msra.mxu1 %v3182_v54  ;;  %v1706_v23 = vmul.f32 %v2607_v27, %v3587_v42 }
 0x49c   : > { %2283 = vmatprep.subr.bf16.mxu1 %v3186_v1  ;;  %v1733_v20 = vpack.c.bf16 %v1705_v14, %v1704_v57  ;;  %2618 = vrcp.f32 %v1599_v5 }
 0x49d   : > { %v2609_v44 = vpop.eup %2608 }
 0x49e   : > { %v1601_v19 = vpop.xlane.xlu0 %1600  ;;  %2268 = vmatmul.mubr.bf16.gmra.mrb[68].mxu1 %v1733_v20  ;;  %v1707_v43 = vmul.f32 %v2609_v44, %v3592_v49  ;;  %v2611_v47 = vpop.eup %2610 }
 0x49f   : > { %2620 = vrcp.f32 %v1601_v19  ;;  %2284 = vmatpush3.bf16.msra.mxu1 %v3186_v1  ;;  %v1708_v54 = vmul.f32 %v2611_v47, %v3594_v63 }
 0x4a0   : > { %2285 = vmatprep.subr.bf16.mxu1 %v3190_v11  ;;  %v1734_v30 = vpack.c.bf16 %v1707_v43, %v1706_v23 }
 0x4a1   : > { %v2613_v45 = vpop.eup %2612 }
 0x4a2   : > { %2271 = vmatprep.mubr.bf16.mxu1 %v1734_v30  ;;  %v1709_v53 = vmul.f32 %v2613_v45, %v3598_v17  ;;  %v2615_v41 = vpop.eup %2614 }
 0x4a3   : > { %2286 = vmatpush3.bf16.msra.mxu1 %v3190_v11  ;;  %v1710_v31 = vmul.f32 %v2615_v41, %v3600_v33 }
 0x4a4   : > { %2287 = vmatprep.subr.bf16.mxu1 %v3194_v16  ;;  %v1735_v42 = vpack.c.bf16 %v1709_v53, %v1708_v54 }
 0x4a5   : > { %v2617_v49 = vpop.eup %2616 }
 0x4a6   : > { %2272 = vmatmul.mubr.bf16.gmra.mrb[72].mxu1 %v1735_v42  ;;  %v1711_v1 = vmul.f32 %v2617_v49, %v3604_v52  ;;  %v2619_v38 = vpop.eup %2618 }
 0x4a7   : > { %2288 = vmatpush3.bf16.msra.mxu1 %v3194_v16  ;;  %v1712_v17 = vmul.f32 %v2619_v38, %v3606_v61 }
 0x4a8   : > { %2289 = vmatprep.subr.bf16.mxu1 %v3202_v21  ;;  %v1736_v63 = vpack.c.bf16 %v1711_v1, %v1710_v31 }
 0x4a9   : > { %v2621_v13 = vpop.eup %2620 }
 0x4aa   : > { %2275 = vmatprep.mubr.bf16.mxu1 %v1736_v63  ;;  %v1713_v11 = vmul.f32 %v2621_v13, %v3610_v62 }
 0x4ab   : > { %2290 = vmatpush3.bf16.msra.mxu1 %v3202_v21 }
 0x4ac   : > { %2291 = vmatprep.subr.bf16.mxu1 %v3210_v51  ;;  %v1737_v55 = vpack.c.bf16 %v1713_v11, %v1712_v17 }
 0x4ae   : > { %2276 = vmatmul.mubr.bf16.gmra.mrb[76].mxu1 %v1737_v55 }
 0x4af   : > { %2292 = vmatpush3.bf16.msra.mxu1 %v3210_v51 }
 0x4b0   : > { %2293 = vmatprep.subr.bf16.mxu1 %v3218_v59 }
 0x4b3   : > { %2294 = vmatpush3.bf16.msra.mxu1 %v3218_v59 }
 0x4be   : > { %v1603_v16 = vpop.xlane.xlu1 %1602 }
 0x4bf   : > { %2622 = vrcp.f32 %v1603_v16 }
 0x4c0   : > { %v1605_v33 = vpop.xlane.xlu0 %1604 }
 0x4c1   : > { %2624 = vrcp.f32 %v1605_v33 }
 0x4c2   : > { %v1607_v52 = vpop.xlane.xlu1 %1606 }
 0x4c3   : > { %2626 = vrcp.f32 %v1607_v52 }
 0x4c4   : > { %v1609_v61 = vpop.xlane.xlu0 %1608 }
 0x4c5   : > { %2628 = vrcp.f32 %v1609_v61 }
 0x4c6   : > { %v1611_v62 = vpop.xlane.xlu1 %1610 }
 0x4c7   : > { %2630 = vrcp.f32 %v1611_v62 }
 0x4c8   : > { %v1613_v21 = vpop.xlane.xlu0 %1612 }
 0x4c9   : > { %v2623_v22 = vpop.eup %2622  ;;  %2632 = vrcp.f32 %v1613_v21 }
 0x4ca   : > { %v1615_v12 = vpop.xlane.xlu1 %1614  ;;  %v1714_v50 = vmul.f32 %v2623_v22, %v3620_v39 }
 0x4cb   : > { %v2625_v58 = vpop.eup %2624  ;;  %2634 = vrcp.f32 %v1615_v12 }
 0x4cc   : > { %v1617_v51 = vpop.xlane.xlu0 %1616  ;;  %v1715_v59 = vmul.f32 %v2625_v58, %v3624_v6 }
 0x4cd   : > { %v2627_v25 = vpop.eup %2626  ;;  %2636 = vrcp.f32 %v1617_v51 }
 0x4ce   : > { %v1619_v56 = vpop.xlane.xlu1 %1618  ;;  %v1738_v60 = vpack.c.bf16 %v1715_v59, %v1714_v50  ;;  %v1716_v34 = vmul.f32 %v2627_v25, %v3628_v24 }
 0x4cf   : > { %v2629_v36 = vpop.eup %2628  ;;  %2638 = vrcp.f32 %v1619_v56 }
 0x4d0   : > { %v1717_v10 = vmul.f32 %v2629_v36, %v3632_v8  ;;  %v1621_v26 = vpop.xlane.xlu0 %1620  ;;  %2295 = vmatprep.mubr.bf16.mxu1 %v1738_v60 }
 0x4d1   : > { %v2631_v15 = vpop.eup %2630  ;;  %2640 = vrcp.f32 %v1621_v26 }
 0x4d2   : > { %v1623_v7 = vpop.xlane.xlu1 %1622  ;;  %v1739_v18 = vpack.c.bf16 %v1717_v10, %v1716_v34  ;;  %v1718_v6 = vmul.f32 %v2631_v15, %v3636_v37 }
 0x4d3   : > { %v2633_v32 = vpop.eup %2632  ;;  %2642 = vrcp.f32 %v1623_v7 }
 0x4d4   : > { %v1625_v39 = vpop.xlane.xlu0 %1624  ;;  %2296 = vmatmul.mubr.bf16.vlgmr.msra.gmra.mrb[80].mxu1 %v1739_v18  ;;  %v1719_v57 = vmul.f32 %v2633_v32, %v3640_v0 }
 0x4d5   : > { %v2635_v14 = vpop.eup %2634  ;;  %2644 = vrcp.f32 %v1625_v39 }
 0x4d6   : > { %v1627_v27 = vpop.xlane.xlu1 %1626  ;;  %v1740_v24 = vpack.c.bf16 %v1719_v57, %v1718_v6  ;;  %v1720_v20 = vmul.f32 %v2635_v14, %v3644_v35 }
 0x4d7   : > { %v2637_v5 = vpop.eup %2636  ;;  %2646 = vrcp.f32 %v1627_v27 }
 0x4d8   : > { %v1629_v8 = vpop.xlane.xlu0 %1628  ;;  %2299 = vmatprep.mubr.bf16.mxu1 %v1740_v24  ;;  %v1721_v44 = vmul.f32 %v2637_v5, %v3648_v28 }
 0x4d9   : > { %v2639_v19 = vpop.eup %2638  ;;  %2648 = vrcp.f32 %v1629_v8 }
 0x4da   : > { %v1631_v23 = vpop.xlane.xlu1 %1630  ;;  %v1741_v43 = vpack.c.bf16 %v1721_v44, %v1720_v20  ;;  %v1722_v0 = vmul.f32 %v2639_v19, %v3652_v40 }
 0x4db   : > { %v2641_v47 = vpop.eup %2640  ;;  %2650 = vrcp.f32 %v1631_v23 }
 0x4dc   : > { %v1633_v37 = vpop.xlane.xlu0 %1632  ;;  %2300 = vmatmul.mubr.bf16.gmra.mrb[84].mxu1 %v1741_v43  ;;  %v1723_v30 = vmul.f32 %v2641_v47, %v3656_v9 }
 0x4dd   : > { %v2643_v45 = vpop.eup %2642  ;;  %2652 = vrcp.f32 %v1633_v37 }
 0x4de   : > { %v1742_v54 = vpack.c.bf16 %v1723_v30, %v1722_v0  ;;  %v1724_v35 = vmul.f32 %v2643_v45, %v3659_v29 }
 0x4df   : > { %v2645_v53 = vpop.eup %2644 }
 0x4e0   : > { %2303 = vmatprep.mubr.bf16.mxu1 %v1742_v54  ;;  %v1725_v28 = vmul.f32 %v2645_v53, %v3662_v3 }
 0x4e1   : > { %v2647_v41 = vpop.eup %2646 }
 0x4e2   : > { %v1743_v42 = vpack.c.bf16 %v1725_v28, %v1724_v35  ;;  %v1726_v31 = vmul.f32 %v2647_v41, %v3665_v2 }
 0x4e3   : > { %v2649_v49 = vpop.eup %2648 }
 0x4e4   : > { %2304 = vmatmul.mubr.bf16.gmra.mrb[88].mxu1 %v1743_v42  ;;  %v1727_v40 = vmul.f32 %v2649_v49, %v3668_v46 }
 0x4e5   : > { %v2651_v1 = vpop.eup %2650 }
 0x4e6   : > { %v1744_v9 = vpack.c.bf16 %v1727_v40, %v1726_v31  ;;  %v1728_v63 = vmul.f32 %v2651_v1, %v3671_v48 }
 0x4e7   : > { %v2653_v38 = vpop.eup %2652 }
 0x4e8   : > { %2307 = vmatprep.mubr.bf16.mxu1 %v1744_v9  ;;  %v1729_v13 = vmul.f32 %v2653_v38, %v3674_v4 }
 0x4ea   : > { %v1745_v29 = vpack.c.bf16 %v1729_v13, %v1728_v63 }
 0x4ec   : > { %2308 = vmatmul.mubr.bf16.gmra.mrb[92].mxu1 %v1745_v29 }
 0x569   : > { %v2265_v3 = vpop.f32.mrb[64].mxu1 }
 0x56a   : > { %1942 = vst.msk [vmem:[%s3729_s16 + $0x10] sm:$0xff] %vm1095_vm0, %v2265_v3  ;;  %v1780_v2 = vpop.f32.mrb[65].mxu1 }
 0x56b   : > { %1940 = vst.msk [vmem:[%s3729_s16] sm:$0xff] %vm1095_vm0, %v1780_v2  ;;  %v2266_v46 = vpop.f32.mrb[66].mxu1 }
 0x56c   : > { %1943 = vst.msk [vmem:[%s3729_s16 + $0x18] sm:$0xff] %vm1095_vm0, %v2266_v46  ;;  %v1783_v48 = vpop.f32.mrb[67].mxu1 }
 0x56d   : > { %1941 = vst.msk [vmem:[%s3729_s16 + $0x8] sm:$0xff] %vm1095_vm0, %v1783_v48 }
 0x571   : > { %v2269_v4 = vpop.f32.mrb[68].mxu1 }
 0x572   : > { %1946 = vst.msk [vmem:[%s3729_s16 + $0x30] sm:$0xff] %vm1095_vm0, %v2269_v4  ;;  %v1796_v17 = vpop.f32.mrb[69].mxu1 }
 0x573   : > { %1944 = vst.msk [vmem:[%s3729_s16 + $0x20] sm:$0xff] %vm1095_vm0, %v1796_v17  ;;  %v2270_v11 = vpop.f32.mrb[70].mxu1 }
 0x574   : > { %1947 = vst.msk [vmem:[%s3729_s16 + $0x38] sm:$0xff] %vm1095_vm0, %v2270_v11  ;;  %v1799_v55 = vpop.f32.mrb[71].mxu1 }
 0x575   : > { %1945 = vst.msk [vmem:[%s3729_s16 + $0x28] sm:$0xff] %vm1095_vm0, %v1799_v55 }
 0x579   : > { %v2273_v16 = vpop.f32.mrb[72].mxu1 }
 0x57a   : > { %1950 = vst.msk [vmem:[%s3729_s16 + $0x50] sm:$0xff] %vm1095_vm0, %v2273_v16  ;;  %v1812_v33 = vpop.f32.mrb[73].mxu1 }
 0x57b   : > { %1948 = vst.msk [vmem:[%s3729_s16 + $0x40] sm:$0xff] %vm1095_vm0, %v1812_v33  ;;  %v2274_v52 = vpop.f32.mrb[74].mxu1 }
 0x57c   : > { %1951 = vst.msk [vmem:[%s3729_s16 + $0x58] sm:$0xff] %vm1095_vm0, %v2274_v52  ;;  %v1815_v61 = vpop.f32.mrb[75].mxu1 }
 0x57d   : > { %1949 = vst.msk [vmem:[%s3729_s16 + $0x48] sm:$0xff] %vm1095_vm0, %v1815_v61 }
 0x581   : > { %v2277_v62 = vpop.f32.mrb[76].mxu1 }
 0x582   : > { %1954 = vst.msk [vmem:[%s3729_s16 + $0x70] sm:$0xff] %vm1095_vm0, %v2277_v62  ;;  %v1828_v21 = vpop.f32.mrb[77].mxu1 }
 0x583   : > { %1952 = vst.msk [vmem:[%s3729_s16 + $0x60] sm:$0xff] %vm1095_vm0, %v1828_v21  ;;  %v2278_v22 = vpop.f32.mrb[78].mxu1 }
 0x584   : > { %1955 = vst.msk [vmem:[%s3729_s16 + $0x78] sm:$0xff] %vm1095_vm0, %v2278_v22  ;;  %v1831_v12 = vpop.f32.mrb[79].mxu1 }
 0x585   : > { %1953 = vst.msk [vmem:[%s3729_s16 + $0x68] sm:$0xff] %vm1095_vm0, %v1831_v12 }
 0x5a7   : > { %v2297_v58 = vpop.f32.mrb[80].mxu1 }
 0x5a8   : > { %1958 = vst.msk [vmem:[%s3729_s16 + $0x90] sm:$0xff] %vm1095_vm0, %v2297_v58  ;;  %v1877_v51 = vpop.f32.mrb[81].mxu1 }
 0x5a9   : > { %1956 = vst.msk [vmem:[%s3729_s16 + $0x80] sm:$0xff] %vm1095_vm0, %v1877_v51  ;;  %v2298_v50 = vpop.f32.mrb[82].mxu1 }
 0x5aa   : > { %1959 = vst.msk [vmem:[%s3729_s16 + $0x98] sm:$0xff] %vm1095_vm0, %v2298_v50  ;;  %v1880_v59 = vpop.f32.mrb[83].mxu1 }
 0x5ab   : > { %1957 = vst.msk [vmem:[%s3729_s16 + $0x88] sm:$0xff] %vm1095_vm0, %v1880_v59 }
 0x5af   : > { %v2301_v25 = vpop.f32.mrb[84].mxu1 }
 0x5b0   : > { %1962 = vst.msk [vmem:[%s3729_s16 + $0xb0] sm:$0xff] %vm1095_vm0, %v2301_v25  ;;  %v1893_v56 = vpop.f32.mrb[85].mxu1 }
 0x5b1   : > { %1960 = vst.msk [vmem:[%s3729_s16 + $0xa0] sm:$0xff] %vm1095_vm0, %v1893_v56  ;;  %v2302_v60 = vpop.f32.mrb[86].mxu1 }
 0x5b2   : > { %1963 = vst.msk [vmem:[%s3729_s16 + $0xb8] sm:$0xff] %vm1095_vm0, %v2302_v60  ;;  %v1896_v36 = vpop.f32.mrb[87].mxu1 }
 0x5b3   : > { %1961 = vst.msk [vmem:[%s3729_s16 + $0xa8] sm:$0xff] %vm1095_vm0, %v1896_v36 }
 0x5b7   : > { %v2305_v34 = vpop.f32.mrb[88].mxu1 }
 0x5b8   : > { %1966 = vst.msk [vmem:[%s3729_s16 + $0xd0] sm:$0xff] %vm1095_vm0, %v2305_v34  ;;  %v1909_v10 = vpop.f32.mrb[89].mxu1 }
 0x5b9   : > { %1964 = vst.msk [vmem:[%s3729_s16 + $0xc0] sm:$0xff] %vm1095_vm0, %v1909_v10  ;;  %v2306_v26 = vpop.f32.mrb[90].mxu1 }
 0x5ba   : > { %1967 = vst.msk [vmem:[%s3729_s16 + $0xd8] sm:$0xff] %vm1095_vm0, %v2306_v26  ;;  %v1912_v15 = vpop.f32.mrb[91].mxu1 }
 0x5bb   : > { %1965 = vst.msk [vmem:[%s3729_s16 + $0xc8] sm:$0xff] %vm1095_vm0, %v1912_v15 }
 0x5bf   : > { %v2309_v7 = vpop.f32.mrb[92].mxu1 }
 0x5c0   : > { %1970 = vst.msk [vmem:[%s3729_s16 + $0xf0] sm:$0xff] %vm1095_vm0, %v2309_v7  ;;  %v1925_v18 = vpop.f32.mrb[93].mxu1 }
 0x5c1   : > { %1968 = vst.msk [vmem:[%s3729_s16 + $0xe0] sm:$0xff] %vm1095_vm0, %v1925_v18  ;;  %v2310_v32 = vpop.f32.mrb[94].mxu1 }
 0x5c2   : > { %1971 = vst.msk [vmem:[%s3729_s16 + $0xf8] sm:$0xff] %vm1095_vm0, %v2310_v32  ;;  %v1928_v39 = vpop.f32.mrb[95].mxu1 }
 0x5c3   : > { %1969 = vst.msk [vmem:[%s3729_s16 + $0xe8] sm:$0xff] %vm1095_vm0, %v1928_v39 }
 0x5c4 PF: > { %p12_p8 = scmp.ge.s32.totalorder %s2761_s14, 4   ;;  %s3814_s9 = smov %s2710_s10 }
 0x5c5   : > { %s3815_s10 = smov %s2714_s11  ;;  %s3816_s11 = smov %s2771_s17 }
 0x5c6   : > { %s3817_s12 = smov %s2761_s14  ;;  %14 = sbr.rel (!%p12_p8) target bundleno = 3 (0x3), region = 68 }
 0x5cd   :  { %1996 = vsyncpa [#allocation3], 1 }
 0x5ce   :  { %1998 = vsyncpa [#allocation3 + $0x1], 1 }

</bundles_post_ra>
